<compile_context>
chip_gen: v6e
topology: v6e:2x2x1
jax: 0.10.0
libtpu: 0.0.40
codegen_flags: <defaults>
</compile_context>

<pallas_src>
import functools

import jax
import jax.numpy as jnp
from jax.experimental import pallas as pl
from jax.experimental.pallas import tpu as pltpu

_SQRT2_INV = 0.7071067811865475
_BN_EPS = 1e-5


def _shift_prev(x):
    """x shifted right by one along the lane axis (out[:, j] = x[:, j-1]).

    The wrapped-in boundary column is garbage and must be masked by the caller.
    Uses the XLU lane rotate when the width is vreg-aligned; otherwise a plain
    concat of unit-stride slices (always lowers cleanly)."""
    w = x.shape[-1]
    if w % 128 == 0:
        return pltpu.roll(x, 1, axis=1)
    return jnp.concatenate([x[:, w - 1:], x[:, :w - 1]], axis=1)


def _shift_next(x):
    """x shifted left by one along the lane axis (out[:, j] = x[:, j+1])."""
    w = x.shape[-1]
    if w % 128 == 0:
        return pltpu.roll(x, w - 1, axis=1)
    return jnp.concatenate([x[:, 1:], x[:, :1]], axis=1)


def _unet_down_kernel(x_ref, w1_ref, w234_ref, gb_ref, o_ref, *, Lh):
    """4x [Conv1d(k=3,p=1, bias dropped) + BatchNorm1d(batch stats) + exact GELU] + MaxPool1d(2).

    x_ref:    (2, Cin, N*Lh)  even/odd de-interleaved input, channels on sublanes
    w1_ref:   (3, Cout, Cin)  layer-1 conv taps (t=0: x[l-1], t=1: x[l], t=2: x[l+1])
    w234_ref: (3, 3, Cout, Cout) taps for layers 2..4
    gb_ref:   (4, 2, Cout, 1) BN gamma/beta per layer
    o_ref:    (Cout, N*Lh)    max-pooled output
    """
    nlh = x_ref.shape[2]

    # Masks zeroing the shifted-in column wherever a k=3 tap would cross a batch
    # segment boundary (== the conv's zero padding). Computed once, shared by all layers.
    col = jax.lax.broadcasted_iota(jnp.int32, (1, nlh), 1)
    jpos = col % Lh
    mask_start = (jpos != 0).astype(jnp.float32)       # even output l=2j needs x[l-1]
    mask_end = (jpos != Lh - 1).astype(jnp.float32)    # odd output l=2j+1 needs x[l+1]
    inv_count = jnp.float32(1.0 / (2 * nlh))           # BN element count = batch * length

    def conv_bn_gelu(he, ho, w_prev, w_mid, w_next, gamma, beta):
        # he/ho: (Cin, N*Lh) activations at even / odd length positions.
        f32 = jnp.float32
        prev_e = _shift_prev(ho) * mask_start          # x[2j-1] (zero-padded at segment start)
        next_o = _shift_next(he) * mask_end            # x[2j+2] (zero-padded at segment end)
        # Conv1d(k=3, pad=1): 3 accumulating matmuls per stream (no lane concat).
        ye = (jnp.dot(w_prev, prev_e, preferred_element_type=f32)
              + jnp.dot(w_mid, he, preferred_element_type=f32)
              + jnp.dot(w_next, ho, preferred_element_type=f32))
        yo = (jnp.dot(w_prev, he, preferred_element_type=f32)
              + jnp.dot(w_mid, ho, preferred_element_type=f32)
              + jnp.dot(w_next, next_o, preferred_element_type=f32))

        # BatchNorm1d (training-mode batch stats) folded into one scale/shift so the
        # full-size tensors see a single FMA pass. Sums stay in exact f32 on VPU/XLU.
        s1 = jnp.sum(ye, axis=1, keepdims=True) + jnp.sum(yo, axis=1, keepdims=True)
        s2 = (jnp.sum(ye * ye, axis=1, keepdims=True)
              + jnp.sum(yo * yo, axis=1, keepdims=True))
        mean = s1 * inv_count
        var = jnp.maximum(s2 * inv_count - mean * mean, 0.0)
        scale = gamma * jax.lax.rsqrt(var + _BN_EPS)                 # (Cout, 1)
        shift = beta - mean * scale                                  # (Cout, 1)
        ye = ye * scale + shift
        yo = yo * scale + shift
        # Exact erf GELU == nn.GELU() default (tanh approx would be EUP-cheap but
        # changes numerics vs the PyTorch module).
        ye = 0.5 * ye * (1.0 + jax.lax.erf(ye * _SQRT2_INV))
        yo = 0.5 * yo * (1.0 + jax.lax.erf(yo * _SQRT2_INV))
        return ye, yo

    he, ho = conv_bn_gelu(x_ref[0], x_ref[1],
                          w1_ref[0], w1_ref[1], w1_ref[2],
                          gb_ref[0, 0], gb_ref[0, 1])
    for i in range(3):
        he, ho = conv_bn_gelu(he, ho,
                              w234_ref[i, 0], w234_ref[i, 1], w234_ref[i, 2],
                              gb_ref[i + 1, 0], gb_ref[i + 1, 1])

    # MaxPool1d(kernel_size=2, stride=2): pool pairs are exactly (even, odd) -> one max.
    o_ref[...] = jnp.maximum(he, ho)


def unet_down(x_ncl, params):
    """UnetDown forward. x_ncl: (N, C_in, L) f32 with even L -> (N, C_out, L // 2) f32."""
    x = x_ncl.astype(jnp.float32)
    n, cin, length = x.shape
    assert length % 2 == 0, "UnetDown Pallas kernel requires an even length"
    # TODO(synk): odd L (PyTorch MaxPool1d drops the trailing element) is not handled.
    lh = length // 2
    nlh = n * lh
    cout = params[0][0].shape[0]

    # De-interleave & flatten in plain XLA (touches only the small input; the lane axis
    # L stays last everywhere, so no expensive lane-axis transposes are introduced).
    x_eo = jnp.stack([x[:, :, 0::2], x[:, :, 1::2]])              # (2, N, Cin, Lh)
    x_eo = jnp.transpose(x_eo, (0, 2, 1, 3)).reshape(2, cin, nlh)  # (2, Cin, N*Lh)

    # Pack parameters into 4 kernel operands; conv biases are dropped (dead under
    # training-mode BatchNorm -- the reference keeps them to demonstrate the cancellation).
    w1 = jnp.transpose(params[0][0], (2, 0, 1))                   # (3, Cout, Cin)
    w234 = jnp.stack([jnp.transpose(params[i][0], (2, 0, 1))
                      for i in range(1, 4)])                      # (3, 3, Cout, Cout)
    gb = jnp.stack([jnp.stack([g.reshape(cout, 1), be.reshape(cout, 1)])
                    for (_, _, g, be) in params])                 # (4, 2, Cout, 1)

    # Explicit scoped-VMEM budget (v5e default is only 16 MiB); sized from padded tiles.
    lane_pad = -(-nlh // 128) * 128
    row_pad = lambda c: -(-c // 8) * 8
    vmem_bytes = 4 * lane_pad * (2 * row_pad(cin) + 12 * row_pad(cout)) + (2 << 20)
    vmem_limit = int(min(max(vmem_bytes, 8 << 20), 64 << 20))

    out = pl.pallas_call(
        functools.partial(_unet_down_kernel, Lh=lh),
        out_shape=jax.ShapeDtypeStruct((cout, nlh), jnp.float32),
        in_specs=[pl.BlockSpec(memory_space=pltpu.MemorySpace.VMEM)] * 4,
        out_specs=pl.BlockSpec(memory_space=pltpu.MemorySpace.VMEM),
        compiler_params=pltpu.CompilerParams(vmem_limit_bytes=vmem_limit),
    )(x_eo, w1, w234, gb)

    # (Cout, N*Lh) -> (N, Cout, Lh): leading-dim swap only, lane axis untouched.
    return jnp.transpose(out.reshape(cout, n, lh), (1, 0, 2))


def init_params(key, in_channels, out_channels):
    """Deterministic synthetic parameters for the 4 Conv1d+BatchNorm1d layers (PyTorch layouts)."""
    dims = [(in_channels, out_channels)] + [(out_channels, out_channels)] * 3
    params = []
    for ci, co in dims:
        key, kw, kb = jax.random.split(key, 3)
        w = jax.random.normal(kw, (co, ci, 3), jnp.float32) * 0.1   # Conv1d weight (out, in, k)
        b = jax.random.normal(kb, (co,), jnp.float32) * 0.1         # conv bias (used only by ref)
        g = jnp.ones((co,), jnp.float32)                            # BN gamma init
        be = jnp.zeros((co,), jnp.float32)                          # BN beta init
        params.append((w, b, g, be))
    return params


def unet_down_ref(x_ncl, params):
    """Independent pure-JAX reference (lax.conv, conv bias kept, two-pass BN stats)."""
    h = x_ncl.astype(jnp.float32)
    for (w, b, g, be) in params:
        h = jax.lax.conv_general_dilated(
            h, w, window_strides=(1,), padding=((1, 1),),
            dimension_numbers=("NCW", "OIW", "NCW"))
        h = h + b.reshape(1, -1, 1)                                 # bias (cancels in train-mode BN)
        mean = jnp.mean(h, axis=(0, 2), keepdims=True)
        var = jnp.mean((h - mean) ** 2, axis=(0, 2), keepdims=True)
        h = (h - mean) / jnp.sqrt(var + _BN_EPS)
        h = h * g.reshape(1, -1, 1) + be.reshape(1, -1, 1)
        h = 0.5 * h * (1.0 + jax.lax.erf(h * _SQRT2_INV))
    n, c, length = h.shape
    lh = length // 2
    return h[:, :, :2 * lh].reshape(n, c, lh, 2).max(axis=3)


if __name__ == "__main__":
    key = jax.random.PRNGKey(0)
    k_x, k_p = jax.random.split(key)

    N, C_IN, C_OUT, L = 2, 4, 8, 16
    x = jax.random.normal(k_x, (N, C_IN, L), jnp.float32)           # PyTorch NCL input
    params = init_params(k_p, C_IN, C_OUT)

    out = jax.block_until_ready(unet_down(x, params))
    ref = jax.block_until_ready(unet_down_ref(x, params))

    assert out.shape == (N, C_OUT, L // 2), out.shape
    max_err = jnp.max(jnp.abs(out - ref))
    assert jnp.allclose(out, ref, atol=2e-3, rtol=2e-3), (
        f"mismatch vs reference: max abs err {max_err}")

    print("KERNEL_OK")
</pallas_src>

<mosaic_0001>
module attributes {stable_mosaic.version = 11 : i64} {
  func.func @_unet_down_kernel(%arg0: memref<2x4x16xf32, #tpu.memory_space<vmem>>, %arg1: memref<3x8x4xf32, #tpu.memory_space<vmem>>, %arg2: memref<3x3x8x8xf32, #tpu.memory_space<vmem>>, %arg3: memref<4x2x8x1xf32, #tpu.memory_space<vmem>>, %arg4: memref<8x16xf32, #tpu.memory_space<vmem>>) attributes {dimension_semantics = [], scalar_prefetch = 0 : i64, scratch_operands = 0 : i64, tpu.core_type = #tpu.core_type<tc>} {
    %0 = tpu.iota {dimensions = array<i32: 1>} : vector<1x16xi32>
    %c8_i32 = arith.constant 8 : i32
    %c0_i32 = arith.constant 0 : i32
    %1 = arith.cmpi eq, %c8_i32, %c0_i32 : i32
    %c1_i32 = arith.constant 1 : i32
    %2 = arith.select %1, %c1_i32, %c8_i32 : i32
    %3 = vector.broadcast %2 : i32 to vector<1x16xi32>
    %4 = arith.remsi %0, %3 : vector<1x16xi32>
    %c0_i32_0 = arith.constant 0 : i32
    %5 = vector.broadcast %c0_i32_0 : i32 to vector<1x16xi32>
    %6 = arith.cmpi ne, %4, %5 : vector<1x16xi32>
    %c0_i32_1 = arith.constant 0 : i32
    %7 = vector.broadcast %c0_i32_1 : i32 to vector<1x16xi32>
    %8 = arith.cmpi slt, %4, %7 : vector<1x16xi32>
    %c0_i32_2 = arith.constant 0 : i32
    %9 = arith.cmpi slt, %2, %c0_i32_2 : i32
    %10 = vector.broadcast %9 : i1 to vector<1x16xi1>
    %11 = vector.broadcast %10 : vector<1x16xi1> to vector<1x16xi1>
    %12 = arith.xori %8, %11 : vector<1x16xi1>
    %13 = arith.andi %12, %6 : vector<1x16xi1>
    %14 = vector.broadcast %2 : i32 to vector<1x16xi32>
    %15 = arith.addi %4, %14 : vector<1x16xi32>
    %16 = arith.select %13, %15, %4 : vector<1x16xi1>, vector<1x16xi32>
    %c0_i32_3 = arith.constant 0 : i32
    %17 = vector.broadcast %c0_i32_3 : i32 to vector<1x16xi32>
    %18 = arith.cmpi ne, %16, %17 : vector<1x16xi32>
    %19 = arith.extui %18 : vector<1x16xi1> to vector<1x16xi32>
    %20 = arith.sitofp %19 : vector<1x16xi32> to vector<1x16xf32>
    %c7_i32 = arith.constant 7 : i32
    %21 = vector.broadcast %c7_i32 : i32 to vector<1x16xi32>
    %22 = arith.cmpi ne, %16, %21 : vector<1x16xi32>
    %23 = arith.extui %22 : vector<1x16xi1> to vector<1x16xi32>
    %24 = arith.sitofp %23 : vector<1x16xi32> to vector<1x16xf32>
    %c0 = arith.constant 0 : index
    %c0_4 = arith.constant 0 : index
    %c0_5 = arith.constant 0 : index
    %25 = vector.load %arg0[%c0, %c0_4, %c0_5] : memref<2x4x16xf32, #tpu.memory_space<vmem>>, vector<1x4x16xf32>
    %26 = vector.shape_cast %25 : vector<1x4x16xf32> to vector<4x16xf32>
    %c1 = arith.constant 1 : index
    %c0_6 = arith.constant 0 : index
    %c0_7 = arith.constant 0 : index
    %27 = vector.load %arg0[%c1, %c0_6, %c0_7] : memref<2x4x16xf32, #tpu.memory_space<vmem>>, vector<1x4x16xf32>
    %28 = vector.shape_cast %27 : vector<1x4x16xf32> to vector<4x16xf32>
    %c0_8 = arith.constant 0 : index
    %c0_9 = arith.constant 0 : index
    %c0_10 = arith.constant 0 : index
    %29 = vector.load %arg1[%c0_8, %c0_9, %c0_10] : memref<3x8x4xf32, #tpu.memory_space<vmem>>, vector<1x8x4xf32>
    %30 = vector.shape_cast %29 : vector<1x8x4xf32> to vector<8x4xf32>
    %c1_11 = arith.constant 1 : index
    %c0_12 = arith.constant 0 : index
    %c0_13 = arith.constant 0 : index
    %31 = vector.load %arg1[%c1_11, %c0_12, %c0_13] : memref<3x8x4xf32, #tpu.memory_space<vmem>>, vector<1x8x4xf32>
    %32 = vector.shape_cast %31 : vector<1x8x4xf32> to vector<8x4xf32>
    %c2 = arith.constant 2 : index
    %c0_14 = arith.constant 0 : index
    %c0_15 = arith.constant 0 : index
    %33 = vector.load %arg1[%c2, %c0_14, %c0_15] : memref<3x8x4xf32, #tpu.memory_space<vmem>>, vector<1x8x4xf32>
    %34 = vector.shape_cast %33 : vector<1x8x4xf32> to vector<8x4xf32>
    %c0_16 = arith.constant 0 : index
    %c0_17 = arith.constant 0 : index
    %c0_18 = arith.constant 0 : index
    %c0_19 = arith.constant 0 : index
    %35 = vector.load %arg3[%c0_16, %c0_17, %c0_18, %c0_19] : memref<4x2x8x1xf32, #tpu.memory_space<vmem>>, vector<1x1x8x1xf32>
    %36 = vector.shape_cast %35 : vector<1x1x8x1xf32> to vector<8x1xf32>
    %c0_20 = arith.constant 0 : index
    %c1_21 = arith.constant 1 : index
    %c0_22 = arith.constant 0 : index
    %c0_23 = arith.constant 0 : index
    %37 = vector.load %arg3[%c0_20, %c1_21, %c0_22, %c0_23] : memref<4x2x8x1xf32, #tpu.memory_space<vmem>>, vector<1x1x8x1xf32>
    %38 = vector.shape_cast %37 : vector<1x1x8x1xf32> to vector<8x1xf32>
    %39 = vector.extract_strided_slice %28 {offsets = [0, 15], sizes = [4, 1], strides = [1, 1]} : vector<4x16xf32> to vector<4x1xf32>
    %40 = vector.extract_strided_slice %28 {offsets = [0, 0], sizes = [4, 15], strides = [1, 1]} : vector<4x16xf32> to vector<4x15xf32>
    %41 = tpu.concatenate %39, %40 in 1 : vector<4x1xf32>, vector<4x15xf32> -> vector<4x16xf32>
    %42 = vector.broadcast %20 : vector<1x16xf32> to vector<4x16xf32>
    %43 = arith.mulf %41, %42 : vector<4x16xf32>
    %44 = vector.extract_strided_slice %26 {offsets = [0, 1], sizes = [4, 15], strides = [1, 1]} : vector<4x16xf32> to vector<4x15xf32>
    %45 = vector.extract_strided_slice %26 {offsets = [0, 0], sizes = [4, 1], strides = [1, 1]} : vector<4x16xf32> to vector<4x1xf32>
    %46 = tpu.concatenate %44, %45 in 1 : vector<4x15xf32>, vector<4x1xf32> -> vector<4x16xf32>
    %47 = vector.broadcast %24 : vector<1x16xf32> to vector<4x16xf32>
    %48 = arith.mulf %46, %47 : vector<4x16xf32>
    %cst = arith.constant dense<0.000000e+00> : vector<8x16xf32>
    %49 = tpu.matmul %30, %43, %cst {dimension_numbers = #tpu.dot_dimension_numbers<[1], [0], [0], [1], [0, 0, 1, 1], [], []>} : vector<8x4xf32>, vector<4x16xf32>, vector<8x16xf32> -> vector<8x16xf32>
    %cst_24 = arith.constant dense<0.000000e+00> : vector<8x16xf32>
    %50 = tpu.matmul %32, %26, %cst_24 {dimension_numbers = #tpu.dot_dimension_numbers<[1], [0], [0], [1], [0, 0, 1, 1], [], []>} : vector<8x4xf32>, vector<4x16xf32>, vector<8x16xf32> -> vector<8x16xf32>
    %51 = arith.addf %49, %50 : vector<8x16xf32>
    %cst_25 = arith.constant dense<0.000000e+00> : vector<8x16xf32>
    %52 = tpu.matmul %34, %28, %cst_25 {dimension_numbers = #tpu.dot_dimension_numbers<[1], [0], [0], [1], [0, 0, 1, 1], [], []>} : vector<8x4xf32>, vector<4x16xf32>, vector<8x16xf32> -> vector<8x16xf32>
    %53 = arith.addf %51, %52 : vector<8x16xf32>
    %cst_26 = arith.constant dense<0.000000e+00> : vector<8x16xf32>
    %54 = tpu.matmul %30, %26, %cst_26 {dimension_numbers = #tpu.dot_dimension_numbers<[1], [0], [0], [1], [0, 0, 1, 1], [], []>} : vector<8x4xf32>, vector<4x16xf32>, vector<8x16xf32> -> vector<8x16xf32>
    %cst_27 = arith.constant dense<0.000000e+00> : vector<8x16xf32>
    %55 = tpu.matmul %32, %28, %cst_27 {dimension_numbers = #tpu.dot_dimension_numbers<[1], [0], [0], [1], [0, 0, 1, 1], [], []>} : vector<8x4xf32>, vector<4x16xf32>, vector<8x16xf32> -> vector<8x16xf32>
    %56 = arith.addf %54, %55 : vector<8x16xf32>
    %cst_28 = arith.constant dense<0.000000e+00> : vector<8x16xf32>
    %57 = tpu.matmul %34, %48, %cst_28 {dimension_numbers = #tpu.dot_dimension_numbers<[1], [0], [0], [1], [0, 0, 1, 1], [], []>} : vector<8x4xf32>, vector<4x16xf32>, vector<8x16xf32> -> vector<8x16xf32>
    %58 = arith.addf %56, %57 : vector<8x16xf32>
    %cst_29 = arith.constant dense<0.000000e+00> : vector<8xf32>
    %59 = vector.multi_reduction <add>, %53, %cst_29 [1] : vector<8x16xf32> to vector<8xf32>
    %60 = vector.shape_cast %59 : vector<8xf32> to vector<8x1xf32>
    %cst_30 = arith.constant dense<0.000000e+00> : vector<8xf32>
    %61 = vector.multi_reduction <add>, %58, %cst_30 [1] : vector<8x16xf32> to vector<8xf32>
    %62 = vector.shape_cast %61 : vector<8xf32> to vector<8x1xf32>
    %63 = arith.addf %60, %62 : vector<8x1xf32>
    %64 = arith.mulf %53, %53 : vector<8x16xf32>
    %cst_31 = arith.constant dense<0.000000e+00> : vector<8xf32>
    %65 = vector.multi_reduction <add>, %64, %cst_31 [1] : vector<8x16xf32> to vector<8xf32>
    %66 = vector.shape_cast %65 : vector<8xf32> to vector<8x1xf32>
    %67 = arith.mulf %58, %58 : vector<8x16xf32>
    %cst_32 = arith.constant dense<0.000000e+00> : vector<8xf32>
    %68 = vector.multi_reduction <add>, %67, %cst_32 [1] : vector<8x16xf32> to vector<8xf32>
    %69 = vector.shape_cast %68 : vector<8xf32> to vector<8x1xf32>
    %70 = arith.addf %66, %69 : vector<8x1xf32>
    %cst_33 = arith.constant 3.125000e-02 : f32
    %71 = vector.broadcast %cst_33 : f32 to vector<8x1xf32>
    %72 = arith.mulf %63, %71 : vector<8x1xf32>
    %cst_34 = arith.constant 3.125000e-02 : f32
    %73 = vector.broadcast %cst_34 : f32 to vector<8x1xf32>
    %74 = arith.mulf %70, %73 : vector<8x1xf32>
    %75 = arith.mulf %72, %72 : vector<8x1xf32>
    %76 = arith.subf %74, %75 : vector<8x1xf32>
    %cst_35 = arith.constant 0.000000e+00 : f32
    %77 = vector.broadcast %cst_35 : f32 to vector<8x1xf32>
    %78 = arith.maximumf %76, %77 : vector<8x1xf32>
    %cst_36 = arith.constant 9.99999974E-6 : f32
    %79 = vector.broadcast %cst_36 : f32 to vector<8x1xf32>
    %80 = arith.addf %78, %79 : vector<8x1xf32>
    %81 = math.rsqrt %80 : vector<8x1xf32>
    %82 = arith.mulf %36, %81 : vector<8x1xf32>
    %83 = arith.mulf %72, %82 : vector<8x1xf32>
    %84 = arith.subf %38, %83 : vector<8x1xf32>
    %85 = vector.broadcast %82 : vector<8x1xf32> to vector<8x16xf32>
    %86 = arith.mulf %53, %85 : vector<8x16xf32>
    %87 = vector.broadcast %84 : vector<8x1xf32> to vector<8x16xf32>
    %88 = arith.addf %86, %87 : vector<8x16xf32>
    %89 = vector.broadcast %82 : vector<8x1xf32> to vector<8x16xf32>
    %90 = arith.mulf %58, %89 : vector<8x16xf32>
    %91 = vector.broadcast %84 : vector<8x1xf32> to vector<8x16xf32>
    %92 = arith.addf %90, %91 : vector<8x16xf32>
    %cst_37 = arith.constant 5.000000e-01 : f32
    %93 = vector.broadcast %cst_37 : f32 to vector<8x16xf32>
    %94 = arith.mulf %93, %88 : vector<8x16xf32>
    %cst_38 = arith.constant 0.707106769 : f32
    %95 = vector.broadcast %cst_38 : f32 to vector<8x16xf32>
    %96 = arith.mulf %88, %95 : vector<8x16xf32>
    %97 = math.erf %96 : vector<8x16xf32>
    %cst_39 = arith.constant 1.000000e+00 : f32
    %98 = vector.broadcast %cst_39 : f32 to vector<8x16xf32>
    %99 = arith.addf %98, %97 : vector<8x16xf32>
    %100 = arith.mulf %94, %99 : vector<8x16xf32>
    %cst_40 = arith.constant 5.000000e-01 : f32
    %101 = vector.broadcast %cst_40 : f32 to vector<8x16xf32>
    %102 = arith.mulf %101, %92 : vector<8x16xf32>
    %cst_41 = arith.constant 0.707106769 : f32
    %103 = vector.broadcast %cst_41 : f32 to vector<8x16xf32>
    %104 = arith.mulf %92, %103 : vector<8x16xf32>
    %105 = math.erf %104 : vector<8x16xf32>
    %cst_42 = arith.constant 1.000000e+00 : f32
    %106 = vector.broadcast %cst_42 : f32 to vector<8x16xf32>
    %107 = arith.addf %106, %105 : vector<8x16xf32>
    %108 = arith.mulf %102, %107 : vector<8x16xf32>
    %c0_43 = arith.constant 0 : index
    %c0_44 = arith.constant 0 : index
    %c0_45 = arith.constant 0 : index
    %c0_46 = arith.constant 0 : index
    %109 = vector.load %arg2[%c0_43, %c0_44, %c0_45, %c0_46] : memref<3x3x8x8xf32, #tpu.memory_space<vmem>>, vector<1x1x8x8xf32>
    %110 = vector.shape_cast %109 : vector<1x1x8x8xf32> to vector<8x8xf32>
    %c0_47 = arith.constant 0 : index
    %c1_48 = arith.constant 1 : index
    %c0_49 = arith.constant 0 : index
    %c0_50 = arith.constant 0 : index
    %111 = vector.load %arg2[%c0_47, %c1_48, %c0_49, %c0_50] : memref<3x3x8x8xf32, #tpu.memory_space<vmem>>, vector<1x1x8x8xf32>
    %112 = vector.shape_cast %111 : vector<1x1x8x8xf32> to vector<8x8xf32>
    %c0_51 = arith.constant 0 : index
    %c2_52 = arith.constant 2 : index
    %c0_53 = arith.constant 0 : index
    %c0_54 = arith.constant 0 : index
    %113 = vector.load %arg2[%c0_51, %c2_52, %c0_53, %c0_54] : memref<3x3x8x8xf32, #tpu.memory_space<vmem>>, vector<1x1x8x8xf32>
    %114 = vector.shape_cast %113 : vector<1x1x8x8xf32> to vector<8x8xf32>
    %c1_55 = arith.constant 1 : index
    %c0_56 = arith.constant 0 : index
    %c0_57 = arith.constant 0 : index
    %c0_58 = arith.constant 0 : index
    %115 = vector.load %arg3[%c1_55, %c0_56, %c0_57, %c0_58] : memref<4x2x8x1xf32, #tpu.memory_space<vmem>>, vector<1x1x8x1xf32>
    %116 = vector.shape_cast %115 : vector<1x1x8x1xf32> to vector<8x1xf32>
    %c1_59 = arith.constant 1 : index
    %c1_60 = arith.constant 1 : index
    %c0_61 = arith.constant 0 : index
    %c0_62 = arith.constant 0 : index
    %117 = vector.load %arg3[%c1_59, %c1_60, %c0_61, %c0_62] : memref<4x2x8x1xf32, #tpu.memory_space<vmem>>, vector<1x1x8x1xf32>
    %118 = vector.shape_cast %117 : vector<1x1x8x1xf32> to vector<8x1xf32>
    %119 = vector.extract_strided_slice %108 {offsets = [0, 15], sizes = [8, 1], strides = [1, 1]} : vector<8x16xf32> to vector<8x1xf32>
    %120 = vector.extract_strided_slice %108 {offsets = [0, 0], sizes = [8, 15], strides = [1, 1]} : vector<8x16xf32> to vector<8x15xf32>
    %121 = tpu.concatenate %119, %120 in 1 : vector<8x1xf32>, vector<8x15xf32> -> vector<8x16xf32>
    %122 = vector.broadcast %20 : vector<1x16xf32> to vector<8x16xf32>
    %123 = arith.mulf %121, %122 : vector<8x16xf32>
    %124 = vector.extract_strided_slice %100 {offsets = [0, 1], sizes = [8, 15], strides = [1, 1]} : vector<8x16xf32> to vector<8x15xf32>
    %125 = vector.extract_strided_slice %100 {offsets = [0, 0], sizes = [8, 1], strides = [1, 1]} : vector<8x16xf32> to vector<8x1xf32>
    %126 = tpu.concatenate %124, %125 in 1 : vector<8x15xf32>, vector<8x1xf32> -> vector<8x16xf32>
    %127 = vector.broadcast %24 : vector<1x16xf32> to vector<8x16xf32>
    %128 = arith.mulf %126, %127 : vector<8x16xf32>
    %cst_63 = arith.constant dense<0.000000e+00> : vector<8x16xf32>
    %129 = tpu.matmul %110, %123, %cst_63 {dimension_numbers = #tpu.dot_dimension_numbers<[1], [0], [0], [1], [0, 0, 1, 1], [], []>} : vector<8x8xf32>, vector<8x16xf32>, vector<8x16xf32> -> vector<8x16xf32>
    %cst_64 = arith.constant dense<0.000000e+00> : vector<8x16xf32>
    %130 = tpu.matmul %112, %100, %cst_64 {dimension_numbers = #tpu.dot_dimension_numbers<[1], [0], [0], [1], [0, 0, 1, 1], [], []>} : vector<8x8xf32>, vector<8x16xf32>, vector<8x16xf32> -> vector<8x16xf32>
    %131 = arith.addf %129, %130 : vector<8x16xf32>
    %cst_65 = arith.constant dense<0.000000e+00> : vector<8x16xf32>
    %132 = tpu.matmul %114, %108, %cst_65 {dimension_numbers = #tpu.dot_dimension_numbers<[1], [0], [0], [1], [0, 0, 1, 1], [], []>} : vector<8x8xf32>, vector<8x16xf32>, vector<8x16xf32> -> vector<8x16xf32>
    %133 = arith.addf %131, %132 : vector<8x16xf32>
    %cst_66 = arith.constant dense<0.000000e+00> : vector<8x16xf32>
    %134 = tpu.matmul %110, %100, %cst_66 {dimension_numbers = #tpu.dot_dimension_numbers<[1], [0], [0], [1], [0, 0, 1, 1], [], []>} : vector<8x8xf32>, vector<8x16xf32>, vector<8x16xf32> -> vector<8x16xf32>
    %cst_67 = arith.constant dense<0.000000e+00> : vector<8x16xf32>
    %135 = tpu.matmul %112, %108, %cst_67 {dimension_numbers = #tpu.dot_dimension_numbers<[1], [0], [0], [1], [0, 0, 1, 1], [], []>} : vector<8x8xf32>, vector<8x16xf32>, vector<8x16xf32> -> vector<8x16xf32>
    %136 = arith.addf %134, %135 : vector<8x16xf32>
    %cst_68 = arith.constant dense<0.000000e+00> : vector<8x16xf32>
    %137 = tpu.matmul %114, %128, %cst_68 {dimension_numbers = #tpu.dot_dimension_numbers<[1], [0], [0], [1], [0, 0, 1, 1], [], []>} : vector<8x8xf32>, vector<8x16xf32>, vector<8x16xf32> -> vector<8x16xf32>
    %138 = arith.addf %136, %137 : vector<8x16xf32>
    %cst_69 = arith.constant dense<0.000000e+00> : vector<8xf32>
    %139 = vector.multi_reduction <add>, %133, %cst_69 [1] : vector<8x16xf32> to vector<8xf32>
    %140 = vector.shape_cast %139 : vector<8xf32> to vector<8x1xf32>
    %cst_70 = arith.constant dense<0.000000e+00> : vector<8xf32>
    %141 = vector.multi_reduction <add>, %138, %cst_70 [1] : vector<8x16xf32> to vector<8xf32>
    %142 = vector.shape_cast %141 : vector<8xf32> to vector<8x1xf32>
    %143 = arith.addf %140, %142 : vector<8x1xf32>
    %144 = arith.mulf %133, %133 : vector<8x16xf32>
    %cst_71 = arith.constant dense<0.000000e+00> : vector<8xf32>
    %145 = vector.multi_reduction <add>, %144, %cst_71 [1] : vector<8x16xf32> to vector<8xf32>
    %146 = vector.shape_cast %145 : vector<8xf32> to vector<8x1xf32>
    %147 = arith.mulf %138, %138 : vector<8x16xf32>
    %cst_72 = arith.constant dense<0.000000e+00> : vector<8xf32>
    %148 = vector.multi_reduction <add>, %147, %cst_72 [1] : vector<8x16xf32> to vector<8xf32>
    %149 = vector.shape_cast %148 : vector<8xf32> to vector<8x1xf32>
    %150 = arith.addf %146, %149 : vector<8x1xf32>
    %cst_73 = arith.constant 3.125000e-02 : f32
    %151 = vector.broadcast %cst_73 : f32 to vector<8x1xf32>
    %152 = arith.mulf %143, %151 : vector<8x1xf32>
    %cst_74 = arith.constant 3.125000e-02 : f32
    %153 = vector.broadcast %cst_74 : f32 to vector<8x1xf32>
    %154 = arith.mulf %150, %153 : vector<8x1xf32>
    %155 = arith.mulf %152, %152 : vector<8x1xf32>
    %156 = arith.subf %154, %155 : vector<8x1xf32>
    %cst_75 = arith.constant 0.000000e+00 : f32
    %157 = vector.broadcast %cst_75 : f32 to vector<8x1xf32>
    %158 = arith.maximumf %156, %157 : vector<8x1xf32>
    %cst_76 = arith.constant 9.99999974E-6 : f32
    %159 = vector.broadcast %cst_76 : f32 to vector<8x1xf32>
    %160 = arith.addf %158, %159 : vector<8x1xf32>
    %161 = math.rsqrt %160 : vector<8x1xf32>
    %162 = arith.mulf %116, %161 : vector<8x1xf32>
    %163 = arith.mulf %152, %162 : vector<8x1xf32>
    %164 = arith.subf %118, %163 : vector<8x1xf32>
    %165 = vector.broadcast %162 : vector<8x1xf32> to vector<8x16xf32>
    %166 = arith.mulf %133, %165 : vector<8x16xf32>
    %167 = vector.broadcast %164 : vector<8x1xf32> to vector<8x16xf32>
    %168 = arith.addf %166, %167 : vector<8x16xf32>
    %169 = vector.broadcast %162 : vector<8x1xf32> to vector<8x16xf32>
    %170 = arith.mulf %138, %169 : vector<8x16xf32>
    %171 = vector.broadcast %164 : vector<8x1xf32> to vector<8x16xf32>
    %172 = arith.addf %170, %171 : vector<8x16xf32>
    %cst_77 = arith.constant 5.000000e-01 : f32
    %173 = vector.broadcast %cst_77 : f32 to vector<8x16xf32>
    %174 = arith.mulf %173, %168 : vector<8x16xf32>
    %cst_78 = arith.constant 0.707106769 : f32
    %175 = vector.broadcast %cst_78 : f32 to vector<8x16xf32>
    %176 = arith.mulf %168, %175 : vector<8x16xf32>
    %177 = math.erf %176 : vector<8x16xf32>
    %cst_79 = arith.constant 1.000000e+00 : f32
    %178 = vector.broadcast %cst_79 : f32 to vector<8x16xf32>
    %179 = arith.addf %178, %177 : vector<8x16xf32>
    %180 = arith.mulf %174, %179 : vector<8x16xf32>
    %cst_80 = arith.constant 5.000000e-01 : f32
    %181 = vector.broadcast %cst_80 : f32 to vector<8x16xf32>
    %182 = arith.mulf %181, %172 : vector<8x16xf32>
    %cst_81 = arith.constant 0.707106769 : f32
    %183 = vector.broadcast %cst_81 : f32 to vector<8x16xf32>
    %184 = arith.mulf %172, %183 : vector<8x16xf32>
    %185 = math.erf %184 : vector<8x16xf32>
    %cst_82 = arith.constant 1.000000e+00 : f32
    %186 = vector.broadcast %cst_82 : f32 to vector<8x16xf32>
    %187 = arith.addf %186, %185 : vector<8x16xf32>
    %188 = arith.mulf %182, %187 : vector<8x16xf32>
    %c1_83 = arith.constant 1 : index
    %c0_84 = arith.constant 0 : index
    %c0_85 = arith.constant 0 : index
    %c0_86 = arith.constant 0 : index
    %189 = vector.load %arg2[%c1_83, %c0_84, %c0_85, %c0_86] : memref<3x3x8x8xf32, #tpu.memory_space<vmem>>, vector<1x1x8x8xf32>
    %190 = vector.shape_cast %189 : vector<1x1x8x8xf32> to vector<8x8xf32>
    %c1_87 = arith.constant 1 : index
    %c1_88 = arith.constant 1 : index
    %c0_89 = arith.constant 0 : index
    %c0_90 = arith.constant 0 : index
    %191 = vector.load %arg2[%c1_87, %c1_88, %c0_89, %c0_90] : memref<3x3x8x8xf32, #tpu.memory_space<vmem>>, vector<1x1x8x8xf32>
    %192 = vector.shape_cast %191 : vector<1x1x8x8xf32> to vector<8x8xf32>
    %c1_91 = arith.constant 1 : index
    %c2_92 = arith.constant 2 : index
    %c0_93 = arith.constant 0 : index
    %c0_94 = arith.constant 0 : index
    %193 = vector.load %arg2[%c1_91, %c2_92, %c0_93, %c0_94] : memref<3x3x8x8xf32, #tpu.memory_space<vmem>>, vector<1x1x8x8xf32>
    %194 = vector.shape_cast %193 : vector<1x1x8x8xf32> to vector<8x8xf32>
    %c2_95 = arith.constant 2 : index
    %c0_96 = arith.constant 0 : index
    %c0_97 = arith.constant 0 : index
    %c0_98 = arith.constant 0 : index
    %195 = vector.load %arg3[%c2_95, %c0_96, %c0_97, %c0_98] : memref<4x2x8x1xf32, #tpu.memory_space<vmem>>, vector<1x1x8x1xf32>
    %196 = vector.shape_cast %195 : vector<1x1x8x1xf32> to vector<8x1xf32>
    %c2_99 = arith.constant 2 : index
    %c1_100 = arith.constant 1 : index
    %c0_101 = arith.constant 0 : index
    %c0_102 = arith.constant 0 : index
    %197 = vector.load %arg3[%c2_99, %c1_100, %c0_101, %c0_102] : memref<4x2x8x1xf32, #tpu.memory_space<vmem>>, vector<1x1x8x1xf32>
    %198 = vector.shape_cast %197 : vector<1x1x8x1xf32> to vector<8x1xf32>
    %199 = vector.extract_strided_slice %188 {offsets = [0, 15], sizes = [8, 1], strides = [1, 1]} : vector<8x16xf32> to vector<8x1xf32>
    %200 = vector.extract_strided_slice %188 {offsets = [0, 0], sizes = [8, 15], strides = [1, 1]} : vector<8x16xf32> to vector<8x15xf32>
    %201 = tpu.concatenate %199, %200 in 1 : vector<8x1xf32>, vector<8x15xf32> -> vector<8x16xf32>
    %202 = vector.broadcast %20 : vector<1x16xf32> to vector<8x16xf32>
    %203 = arith.mulf %201, %202 : vector<8x16xf32>
    %204 = vector.extract_strided_slice %180 {offsets = [0, 1], sizes = [8, 15], strides = [1, 1]} : vector<8x16xf32> to vector<8x15xf32>
    %205 = vector.extract_strided_slice %180 {offsets = [0, 0], sizes = [8, 1], strides = [1, 1]} : vector<8x16xf32> to vector<8x1xf32>
    %206 = tpu.concatenate %204, %205 in 1 : vector<8x15xf32>, vector<8x1xf32> -> vector<8x16xf32>
    %207 = vector.broadcast %24 : vector<1x16xf32> to vector<8x16xf32>
    %208 = arith.mulf %206, %207 : vector<8x16xf32>
    %cst_103 = arith.constant dense<0.000000e+00> : vector<8x16xf32>
    %209 = tpu.matmul %190, %203, %cst_103 {dimension_numbers = #tpu.dot_dimension_numbers<[1], [0], [0], [1], [0, 0, 1, 1], [], []>} : vector<8x8xf32>, vector<8x16xf32>, vector<8x16xf32> -> vector<8x16xf32>
    %cst_104 = arith.constant dense<0.000000e+00> : vector<8x16xf32>
    %210 = tpu.matmul %192, %180, %cst_104 {dimension_numbers = #tpu.dot_dimension_numbers<[1], [0], [0], [1], [0, 0, 1, 1], [], []>} : vector<8x8xf32>, vector<8x16xf32>, vector<8x16xf32> -> vector<8x16xf32>
    %211 = arith.addf %209, %210 : vector<8x16xf32>
    %cst_105 = arith.constant dense<0.000000e+00> : vector<8x16xf32>
    %212 = tpu.matmul %194, %188, %cst_105 {dimension_numbers = #tpu.dot_dimension_numbers<[1], [0], [0], [1], [0, 0, 1, 1], [], []>} : vector<8x8xf32>, vector<8x16xf32>, vector<8x16xf32> -> vector<8x16xf32>
    %213 = arith.addf %211, %212 : vector<8x16xf32>
    %cst_106 = arith.constant dense<0.000000e+00> : vector<8x16xf32>
    %214 = tpu.matmul %190, %180, %cst_106 {dimension_numbers = #tpu.dot_dimension_numbers<[1], [0], [0], [1], [0, 0, 1, 1], [], []>} : vector<8x8xf32>, vector<8x16xf32>, vector<8x16xf32> -> vector<8x16xf32>
    %cst_107 = arith.constant dense<0.000000e+00> : vector<8x16xf32>
    %215 = tpu.matmul %192, %188, %cst_107 {dimension_numbers = #tpu.dot_dimension_numbers<[1], [0], [0], [1], [0, 0, 1, 1], [], []>} : vector<8x8xf32>, vector<8x16xf32>, vector<8x16xf32> -> vector<8x16xf32>
    %216 = arith.addf %214, %215 : vector<8x16xf32>
    %cst_108 = arith.constant dense<0.000000e+00> : vector<8x16xf32>
    %217 = tpu.matmul %194, %208, %cst_108 {dimension_numbers = #tpu.dot_dimension_numbers<[1], [0], [0], [1], [0, 0, 1, 1], [], []>} : vector<8x8xf32>, vector<8x16xf32>, vector<8x16xf32> -> vector<8x16xf32>
    %218 = arith.addf %216, %217 : vector<8x16xf32>
    %cst_109 = arith.constant dense<0.000000e+00> : vector<8xf32>
    %219 = vector.multi_reduction <add>, %213, %cst_109 [1] : vector<8x16xf32> to vector<8xf32>
    %220 = vector.shape_cast %219 : vector<8xf32> to vector<8x1xf32>
    %cst_110 = arith.constant dense<0.000000e+00> : vector<8xf32>
    %221 = vector.multi_reduction <add>, %218, %cst_110 [1] : vector<8x16xf32> to vector<8xf32>
    %222 = vector.shape_cast %221 : vector<8xf32> to vector<8x1xf32>
    %223 = arith.addf %220, %222 : vector<8x1xf32>
    %224 = arith.mulf %213, %213 : vector<8x16xf32>
    %cst_111 = arith.constant dense<0.000000e+00> : vector<8xf32>
    %225 = vector.multi_reduction <add>, %224, %cst_111 [1] : vector<8x16xf32> to vector<8xf32>
    %226 = vector.shape_cast %225 : vector<8xf32> to vector<8x1xf32>
    %227 = arith.mulf %218, %218 : vector<8x16xf32>
    %cst_112 = arith.constant dense<0.000000e+00> : vector<8xf32>
    %228 = vector.multi_reduction <add>, %227, %cst_112 [1] : vector<8x16xf32> to vector<8xf32>
    %229 = vector.shape_cast %228 : vector<8xf32> to vector<8x1xf32>
    %230 = arith.addf %226, %229 : vector<8x1xf32>
    %cst_113 = arith.constant 3.125000e-02 : f32
    %231 = vector.broadcast %cst_113 : f32 to vector<8x1xf32>
    %232 = arith.mulf %223, %231 : vector<8x1xf32>
    %cst_114 = arith.constant 3.125000e-02 : f32
    %233 = vector.broadcast %cst_114 : f32 to vector<8x1xf32>
    %234 = arith.mulf %230, %233 : vector<8x1xf32>
    %235 = arith.mulf %232, %232 : vector<8x1xf32>
    %236 = arith.subf %234, %235 : vector<8x1xf32>
    %cst_115 = arith.constant 0.000000e+00 : f32
    %237 = vector.broadcast %cst_115 : f32 to vector<8x1xf32>
    %238 = arith.maximumf %236, %237 : vector<8x1xf32>
    %cst_116 = arith.constant 9.99999974E-6 : f32
    %239 = vector.broadcast %cst_116 : f32 to vector<8x1xf32>
    %240 = arith.addf %238, %239 : vector<8x1xf32>
    %241 = math.rsqrt %240 : vector<8x1xf32>
    %242 = arith.mulf %196, %241 : vector<8x1xf32>
    %243 = arith.mulf %232, %242 : vector<8x1xf32>
    %244 = arith.subf %198, %243 : vector<8x1xf32>
    %245 = vector.broadcast %242 : vector<8x1xf32> to vector<8x16xf32>
    %246 = arith.mulf %213, %245 : vector<8x16xf32>
    %247 = vector.broadcast %244 : vector<8x1xf32> to vector<8x16xf32>
    %248 = arith.addf %246, %247 : vector<8x16xf32>
    %249 = vector.broadcast %242 : vector<8x1xf32> to vector<8x16xf32>
    %250 = arith.mulf %218, %249 : vector<8x16xf32>
    %251 = vector.broadcast %244 : vector<8x1xf32> to vector<8x16xf32>
    %252 = arith.addf %250, %251 : vector<8x16xf32>
    %cst_117 = arith.constant 5.000000e-01 : f32
    %253 = vector.broadcast %cst_117 : f32 to vector<8x16xf32>
    %254 = arith.mulf %253, %248 : vector<8x16xf32>
    %cst_118 = arith.constant 0.707106769 : f32
    %255 = vector.broadcast %cst_118 : f32 to vector<8x16xf32>
    %256 = arith.mulf %248, %255 : vector<8x16xf32>
    %257 = math.erf %256 : vector<8x16xf32>
    %cst_119 = arith.constant 1.000000e+00 : f32
    %258 = vector.broadcast %cst_119 : f32 to vector<8x16xf32>
    %259 = arith.addf %258, %257 : vector<8x16xf32>
    %260 = arith.mulf %254, %259 : vector<8x16xf32>
    %cst_120 = arith.constant 5.000000e-01 : f32
    %261 = vector.broadcast %cst_120 : f32 to vector<8x16xf32>
    %262 = arith.mulf %261, %252 : vector<8x16xf32>
    %cst_121 = arith.constant 0.707106769 : f32
    %263 = vector.broadcast %cst_121 : f32 to vector<8x16xf32>
    %264 = arith.mulf %252, %263 : vector<8x16xf32>
    %265 = math.erf %264 : vector<8x16xf32>
    %cst_122 = arith.constant 1.000000e+00 : f32
    %266 = vector.broadcast %cst_122 : f32 to vector<8x16xf32>
    %267 = arith.addf %266, %265 : vector<8x16xf32>
    %268 = arith.mulf %262, %267 : vector<8x16xf32>
    %c2_123 = arith.constant 2 : index
    %c0_124 = arith.constant 0 : index
    %c0_125 = arith.constant 0 : index
    %c0_126 = arith.constant 0 : index
    %269 = vector.load %arg2[%c2_123, %c0_124, %c0_125, %c0_126] : memref<3x3x8x8xf32, #tpu.memory_space<vmem>>, vector<1x1x8x8xf32>
    %270 = vector.shape_cast %269 : vector<1x1x8x8xf32> to vector<8x8xf32>
    %c2_127 = arith.constant 2 : index
    %c1_128 = arith.constant 1 : index
    %c0_129 = arith.constant 0 : index
    %c0_130 = arith.constant 0 : index
    %271 = vector.load %arg2[%c2_127, %c1_128, %c0_129, %c0_130] : memref<3x3x8x8xf32, #tpu.memory_space<vmem>>, vector<1x1x8x8xf32>
    %272 = vector.shape_cast %271 : vector<1x1x8x8xf32> to vector<8x8xf32>
    %c2_131 = arith.constant 2 : index
    %c2_132 = arith.constant 2 : index
    %c0_133 = arith.constant 0 : index
    %c0_134 = arith.constant 0 : index
    %273 = vector.load %arg2[%c2_131, %c2_132, %c0_133, %c0_134] : memref<3x3x8x8xf32, #tpu.memory_space<vmem>>, vector<1x1x8x8xf32>
    %274 = vector.shape_cast %273 : vector<1x1x8x8xf32> to vector<8x8xf32>
    %c3 = arith.constant 3 : index
    %c0_135 = arith.constant 0 : index
    %c0_136 = arith.constant 0 : index
    %c0_137 = arith.constant 0 : index
    %275 = vector.load %arg3[%c3, %c0_135, %c0_136, %c0_137] : memref<4x2x8x1xf32, #tpu.memory_space<vmem>>, vector<1x1x8x1xf32>
    %276 = vector.shape_cast %275 : vector<1x1x8x1xf32> to vector<8x1xf32>
    %c3_138 = arith.constant 3 : index
    %c1_139 = arith.constant 1 : index
    %c0_140 = arith.constant 0 : index
    %c0_141 = arith.constant 0 : index
    %277 = vector.load %arg3[%c3_138, %c1_139, %c0_140, %c0_141] : memref<4x2x8x1xf32, #tpu.memory_space<vmem>>, vector<1x1x8x1xf32>
    %278 = vector.shape_cast %277 : vector<1x1x8x1xf32> to vector<8x1xf32>
    %279 = vector.extract_strided_slice %268 {offsets = [0, 15], sizes = [8, 1], strides = [1, 1]} : vector<8x16xf32> to vector<8x1xf32>
    %280 = vector.extract_strided_slice %268 {offsets = [0, 0], sizes = [8, 15], strides = [1, 1]} : vector<8x16xf32> to vector<8x15xf32>
    %281 = tpu.concatenate %279, %280 in 1 : vector<8x1xf32>, vector<8x15xf32> -> vector<8x16xf32>
    %282 = vector.broadcast %20 : vector<1x16xf32> to vector<8x16xf32>
    %283 = arith.mulf %281, %282 : vector<8x16xf32>
    %284 = vector.extract_strided_slice %260 {offsets = [0, 1], sizes = [8, 15], strides = [1, 1]} : vector<8x16xf32> to vector<8x15xf32>
    %285 = vector.extract_strided_slice %260 {offsets = [0, 0], sizes = [8, 1], strides = [1, 1]} : vector<8x16xf32> to vector<8x1xf32>
    %286 = tpu.concatenate %284, %285 in 1 : vector<8x15xf32>, vector<8x1xf32> -> vector<8x16xf32>
    %287 = vector.broadcast %24 : vector<1x16xf32> to vector<8x16xf32>
    %288 = arith.mulf %286, %287 : vector<8x16xf32>
    %cst_142 = arith.constant dense<0.000000e+00> : vector<8x16xf32>
    %289 = tpu.matmul %270, %283, %cst_142 {dimension_numbers = #tpu.dot_dimension_numbers<[1], [0], [0], [1], [0, 0, 1, 1], [], []>} : vector<8x8xf32>, vector<8x16xf32>, vector<8x16xf32> -> vector<8x16xf32>
    %cst_143 = arith.constant dense<0.000000e+00> : vector<8x16xf32>
    %290 = tpu.matmul %272, %260, %cst_143 {dimension_numbers = #tpu.dot_dimension_numbers<[1], [0], [0], [1], [0, 0, 1, 1], [], []>} : vector<8x8xf32>, vector<8x16xf32>, vector<8x16xf32> -> vector<8x16xf32>
    %291 = arith.addf %289, %290 : vector<8x16xf32>
    %cst_144 = arith.constant dense<0.000000e+00> : vector<8x16xf32>
    %292 = tpu.matmul %274, %268, %cst_144 {dimension_numbers = #tpu.dot_dimension_numbers<[1], [0], [0], [1], [0, 0, 1, 1], [], []>} : vector<8x8xf32>, vector<8x16xf32>, vector<8x16xf32> -> vector<8x16xf32>
    %293 = arith.addf %291, %292 : vector<8x16xf32>
    %cst_145 = arith.constant dense<0.000000e+00> : vector<8x16xf32>
    %294 = tpu.matmul %270, %260, %cst_145 {dimension_numbers = #tpu.dot_dimension_numbers<[1], [0], [0], [1], [0, 0, 1, 1], [], []>} : vector<8x8xf32>, vector<8x16xf32>, vector<8x16xf32> -> vector<8x16xf32>
    %cst_146 = arith.constant dense<0.000000e+00> : vector<8x16xf32>
    %295 = tpu.matmul %272, %268, %cst_146 {dimension_numbers = #tpu.dot_dimension_numbers<[1], [0], [0], [1], [0, 0, 1, 1], [], []>} : vector<8x8xf32>, vector<8x16xf32>, vector<8x16xf32> -> vector<8x16xf32>
    %296 = arith.addf %294, %295 : vector<8x16xf32>
    %cst_147 = arith.constant dense<0.000000e+00> : vector<8x16xf32>
    %297 = tpu.matmul %274, %288, %cst_147 {dimension_numbers = #tpu.dot_dimension_numbers<[1], [0], [0], [1], [0, 0, 1, 1], [], []>} : vector<8x8xf32>, vector<8x16xf32>, vector<8x16xf32> -> vector<8x16xf32>
    %298 = arith.addf %296, %297 : vector<8x16xf32>
    %cst_148 = arith.constant dense<0.000000e+00> : vector<8xf32>
    %299 = vector.multi_reduction <add>, %293, %cst_148 [1] : vector<8x16xf32> to vector<8xf32>
    %300 = vector.shape_cast %299 : vector<8xf32> to vector<8x1xf32>
    %cst_149 = arith.constant dense<0.000000e+00> : vector<8xf32>
    %301 = vector.multi_reduction <add>, %298, %cst_149 [1] : vector<8x16xf32> to vector<8xf32>
    %302 = vector.shape_cast %301 : vector<8xf32> to vector<8x1xf32>
    %303 = arith.addf %300, %302 : vector<8x1xf32>
    %304 = arith.mulf %293, %293 : vector<8x16xf32>
    %cst_150 = arith.constant dense<0.000000e+00> : vector<8xf32>
    %305 = vector.multi_reduction <add>, %304, %cst_150 [1] : vector<8x16xf32> to vector<8xf32>
    %306 = vector.shape_cast %305 : vector<8xf32> to vector<8x1xf32>
    %307 = arith.mulf %298, %298 : vector<8x16xf32>
    %cst_151 = arith.constant dense<0.000000e+00> : vector<8xf32>
    %308 = vector.multi_reduction <add>, %307, %cst_151 [1] : vector<8x16xf32> to vector<8xf32>
    %309 = vector.shape_cast %308 : vector<8xf32> to vector<8x1xf32>
    %310 = arith.addf %306, %309 : vector<8x1xf32>
    %cst_152 = arith.constant 3.125000e-02 : f32
    %311 = vector.broadcast %cst_152 : f32 to vector<8x1xf32>
    %312 = arith.mulf %303, %311 : vector<8x1xf32>
    %cst_153 = arith.constant 3.125000e-02 : f32
    %313 = vector.broadcast %cst_153 : f32 to vector<8x1xf32>
    %314 = arith.mulf %310, %313 : vector<8x1xf32>
    %315 = arith.mulf %312, %312 : vector<8x1xf32>
    %316 = arith.subf %314, %315 : vector<8x1xf32>
    %cst_154 = arith.constant 0.000000e+00 : f32
    %317 = vector.broadcast %cst_154 : f32 to vector<8x1xf32>
    %318 = arith.maximumf %316, %317 : vector<8x1xf32>
    %cst_155 = arith.constant 9.99999974E-6 : f32
    %319 = vector.broadcast %cst_155 : f32 to vector<8x1xf32>
    %320 = arith.addf %318, %319 : vector<8x1xf32>
    %321 = math.rsqrt %320 : vector<8x1xf32>
    %322 = arith.mulf %276, %321 : vector<8x1xf32>
    %323 = arith.mulf %312, %322 : vector<8x1xf32>
    %324 = arith.subf %278, %323 : vector<8x1xf32>
    %325 = vector.broadcast %322 : vector<8x1xf32> to vector<8x16xf32>
    %326 = arith.mulf %293, %325 : vector<8x16xf32>
    %327 = vector.broadcast %324 : vector<8x1xf32> to vector<8x16xf32>
    %328 = arith.addf %326, %327 : vector<8x16xf32>
    %329 = vector.broadcast %322 : vector<8x1xf32> to vector<8x16xf32>
    %330 = arith.mulf %298, %329 : vector<8x16xf32>
    %331 = vector.broadcast %324 : vector<8x1xf32> to vector<8x16xf32>
    %332 = arith.addf %330, %331 : vector<8x16xf32>
    %cst_156 = arith.constant 5.000000e-01 : f32
    %333 = vector.broadcast %cst_156 : f32 to vector<8x16xf32>
    %334 = arith.mulf %333, %328 : vector<8x16xf32>
    %cst_157 = arith.constant 0.707106769 : f32
    %335 = vector.broadcast %cst_157 : f32 to vector<8x16xf32>
    %336 = arith.mulf %328, %335 : vector<8x16xf32>
    %337 = math.erf %336 : vector<8x16xf32>
    %cst_158 = arith.constant 1.000000e+00 : f32
    %338 = vector.broadcast %cst_158 : f32 to vector<8x16xf32>
    %339 = arith.addf %338, %337 : vector<8x16xf32>
    %340 = arith.mulf %334, %339 : vector<8x16xf32>
    %cst_159 = arith.constant 5.000000e-01 : f32
    %341 = vector.broadcast %cst_159 : f32 to vector<8x16xf32>
    %342 = arith.mulf %341, %332 : vector<8x16xf32>
    %cst_160 = arith.constant 0.707106769 : f32
    %343 = vector.broadcast %cst_160 : f32 to vector<8x16xf32>
    %344 = arith.mulf %332, %343 : vector<8x16xf32>
    %345 = math.erf %344 : vector<8x16xf32>
    %cst_161 = arith.constant 1.000000e+00 : f32
    %346 = vector.broadcast %cst_161 : f32 to vector<8x16xf32>
    %347 = arith.addf %346, %345 : vector<8x16xf32>
    %348 = arith.mulf %342, %347 : vector<8x16xf32>
    %349 = arith.maximumf %340, %348 : vector<8x16xf32>
    %c0_162 = arith.constant 0 : index
    %c0_163 = arith.constant 0 : index
    %350 = vector.load %arg4[%c0_162, %c0_163] : memref<8x16xf32, #tpu.memory_space<vmem>>, vector<8x16xf32>
    tpu.vector_store %arg4[%c0_162, %c0_163], %349 {strides = array<i32>} : memref<8x16xf32, #tpu.memory_space<vmem>>, vector<8x16xf32>,
    return
  }
}

</mosaic_0001>

<bundles_post_ra>
// kernel: tpu_custom_call.1
= control target key start
LH: loop header
LB: loop body
LE: loop exit
PB: predicated region body
PF: predicated region fallthrough
CT: control target
= control target key end

     0   :  { %s2380_s19 = smov 113   ;;  %vm73_vm0 = vcmask 1043456   ;;  %s2381_s20 = smov 127   ;;  %v2382_v2 = vmov 0.0   ;;  %vm69_vm1 = vcmask 31744   ;;  %vm2383_vm2 = vmmov 0   ;;  %s2639_s0 = inlined_call_operand.vmem [shape: f32[2,4,16], index: 0, kind: input, shape index: {}]   ;;  %s2640_s1 = inlined_call_operand.vmem [shape: f32[3,8,4], index: 1, kind: input, shape index: {}]   ;;  %s2641_s2 = inlined_call_operand.vmem [shape: f32[3,3,8,8], index: 2, kind: input, shape index: {}]   ;;  %s2642_s3 = inlined_call_operand.vmem [shape: f32[4,2,8,1], index: 3, kind: input, shape index: {}]   ;;  %s2643_s4 = inlined_call_operand.hbm [shape: f32[8,16], index: 4, kind: output, shape index: {}]  }
   0x1   :  { %v2108_v0 = vld [vmem:[%s2639_s0 + $0x4] sm:$0xf]  ;;  %v38_v1 = vld [vmem:[%s2639_s0] sm:$0xf]  ;;  %2204 = vmatprep.subr.mxu0 %v2382_v2  ;;  %v2109_v3 = vld [vmem:[%s2640_s1 + $0x8] sm:$0xff]  ;;  %2206 = vmatprep.mubr.msk.f32.mxu0 %vm2383_vm2, %v2382_v2 }
   0x2   :  { %50 = vrot.lane.b32.xlu0 %v2108_v0, %s2380_s19  ;;  %60 = vrot.lane.b32.xlu1 %v38_v1, %s2381_s20 }
   0x3   :  { %2205 = vmatpush3.msk.msra.mxu0 %vm73_vm0, %v38_v1 }
   0x4   :  { %9 = vsyncpa [#allocation3], 0  ;;  %2207 = vmatmul.mubr.msk.f32.vlgmr.msra.gmra.mxu0 %vm69_vm1, %v2109_v3  ;;  %2209 = vmatprep.subr.mxu1 %v2382_v2  ;;  %s2384_s0 = smov 1   ;;  %v2110_v4 = vld [vmem:[%s2640_s1 + $0x10] sm:$0xff]  ;;  %s2385_s25 = smov 15   ;;  %v41_v5 = vld [vmem:[%s2640_s1] sm:$0xff]  ;;  %v18_v6 = vlaneseq }
   0x5   :  { %2214 = vmatprep.subr.mxu0 %v2382_v2  ;;  %2211 = vmatprep.mubr.msk.f32.mxu1 %vm2383_vm2, %v2382_v2  ;;  %vm56_vm4 = vcmask 7168   ;;  %vm66_vm5 = vcmask 121856   ;;  %vm512_vm7 = vcmask 130048   ;;  %v2386_v41 = vmov 0   ;;  %v46_v54 = vld [vmem:[%s2642_s3] sm:$0xff]  ;;  %v2111_v57 = vld [vmem:[%s2642_s3 + $0x8] sm:$0xff] }
   0x6   :  { %53 = vrot.lane.b32.xlu0 %v2108_v0, %s2384_s0  ;;  %63 = vrot.lane.b32.xlu1 %v38_v1, %s2385_s25  ;;  %v19_v7 = vand.u32 127, %v18_v6  ;;  %vm590_vm8 = vcmask 64512  }
   0x7   :  { %2215 = vmatpush3.msk.msra.mxu0 %vm73_vm0, %v2108_v0  ;;  %2216 = vmatprep.mubr.msk.f32.mxu0 %vm2383_vm2, %v2382_v2 }
   0x8   :  { %2217 = vmatmul.mubr.msk.f32.vlgmr.msra.gmra.mxu0 %vm69_vm1, %v2110_v4  ;;  %2224 = vmatprep.subr.mxu0 %v2382_v2  ;;  %v24_v8 = vand.u32 7, %v19_v7 }
   0x9   :  { %2225 = vmatpush3.msk.msra.mxu0 %vm73_vm0, %v38_v1  ;;  %2226 = vmatprep.mubr.msk.f32.mxu0 %vm2383_vm2, %v2382_v2 }
   0xa   :  { %2234 = vmatprep.subr.mxu0 %v2382_v2  ;;  %vm32_vm3 = vcmp.ne.s32.totalorder %v24_v8, 0  ;;  %vm35_vm6 = vcmp.ne.s32.totalorder %v24_v8, 7  ;;  %2332 = vset.pattern.permute.xlu1 %v2386_v41 }
   0xb   :  { %v2454_v11 = vsel %vm32_vm3, 1.0, %v2382_v2  ;;  %v2459_v16 = vsel %vm35_vm6, 1.0, %v2382_v2  ;;  %2333 = vset.pattern.permute.xlu0 %v2386_v41 }
   0xc   :  { %2227 = vmatmul.mubr.msk.f32.vlgmr.msra.gmra.mxu0 %vm69_vm1, %v41_v5 }
   0xd   :  { %2236 = vmatprep.mubr.msk.f32.mxu0 %vm2383_vm2, %v2382_v2 }
  0x74   :  { %v51_v9 = vpop.permute.xlu0 %50  ;;  %v61_v10 = vpop.permute.xlu1 %60 }
  0x78   :  { %v54_v12 = vpop.permute.xlu0 %53  ;;  %v64_v14 = vpop.permute.xlu1 %63 }
  0x79   :  { %v57_v13 = vsel %vm56_vm4, %v51_v9, %v54_v12  ;;  %v67_v17 = vsel %vm66_vm5, %v61_v10, %v64_v14 }
  0x7a   :  { %v58_v15 = vmul.f32 %v2454_v11, %v57_v13  ;;  %v68_v18 = vmul.f32 %v2459_v16, %v67_v17  ;;  %v2124_v13 = vld [vmem:[%s2641_s2 + $0x8] sm:$0xff]  ;;  %v563_v17 = vld [vmem:[%s2641_s2] sm:$0xff] }
  0x7c   :  { %2210 = vmatpush3.msk.msra.mxu1 %vm73_vm0, %v58_v15  ;;  %v2125_v15 = vld [vmem:[%s2641_s2 + $0x10] sm:$0xff] }
  0x7d   :  { %2212 = vmatmul.mubr.msk.f32.vlgmr.msra.gmra.mxu1 %vm69_vm1, %v41_v5  ;;  %2219 = vmatprep.subr.mxu1 %v2382_v2 }
  0x7e   :  { %2220 = vmatpush3.msk.msra.mxu1 %vm73_vm0, %v2108_v0  ;;  %2221 = vmatprep.mubr.msk.f32.mxu1 %vm2383_vm2, %v2382_v2 }
  0x7f   :  { %2229 = vmatprep.subr.mxu1 %v2382_v2 }
  0x81   :  { %2222 = vmatmul.mubr.msk.f32.vlgmr.msra.gmra.mxu1 %vm69_vm1, %v2109_v3 }
  0x82   :  { %2230 = vmatpush3.msk.msra.mxu1 %vm73_vm0, %v68_v18  ;;  %2231 = vmatprep.mubr.msk.f32.mxu1 %vm2383_vm2, %v2382_v2 }
  0x83   :  { %2239 = vmatprep.subr.mxu1 %v2382_v2 }
  0x85   :  { %2232 = vmatmul.mubr.msk.f32.vlgmr.msra.gmra.mxu1 %vm69_vm1, %v2110_v4 }
  0x86   :  { %2241 = vmatprep.mubr.msk.f32.mxu1 %vm2383_vm2, %v2382_v2 }
  0xc4   :  { %v142_v19 = vpop.f32.mrf.mxu0 }
  0xc6   :  { %v2208_v20 = vpop.f32.mrf.mxu0 }
  0xc8   :  { %v293_v21 = vpop.f32.mrf.mxu0 }
  0xca   :  { %v2218_v22 = vpop.f32.mrf.mxu0 }
  0xcc   :  { %v434_v23 = vpop.f32.mrf.mxu0 }
  0xce   :  { %v2228_v24 = vpop.f32.mrf.mxu0 }
 0x13d   :  { %v218_v25 = vpop.f32.mrf.mxu1 }
 0x13e   :  { %v219_v26 = vadd.f32 %v218_v25, %v142_v19 }
 0x13f   :  { %v2213_v27 = vpop.f32.mrf.mxu1 }
 0x140   :  { %v297_v28 = vadd.f32 %v293_v21, %v219_v26 }
 0x141   :  { %v364_v29 = vpop.f32.mrf.mxu1 }
 0x142   :  { %v513_v30 = vsel %vm512_vm7, %v297_v28, 0.0  ;;  %v520_v31 = vmul.f32 %v297_v28, %v297_v28  ;;  %v435_v33 = vadd.f32 %v434_v23, %v364_v29 }
 0x143   :  { %514 = vadd.xlane.f32.xlu0 %v513_v30  ;;  %v2223_v32 = vpop.f32.mrf.mxu1 }
 0x144   :  { %v521_v36 = vsel %vm512_vm7, %v520_v31, 0.0 }
 0x145   :  { %v507_v34 = vpop.f32.mrf.mxu1 }
 0x146   :  { %v511_v35 = vadd.f32 %v507_v34, %v435_v33 }
 0x147   :  { %522 = vadd.xlane.f32.xlu0 %v521_v36  ;;  %v2233_v37 = vpop.f32.mrf.mxu1 }
 0x148   :  { %v516_v38 = vsel %vm512_vm7, %v511_v35, 0.0  ;;  %v524_v39 = vmul.f32 %v511_v35, %v511_v35 }
 0x149   :  { %517 = vadd.xlane.f32.xlu1 %v516_v38 }
 0x14a   :  { %v525_v40 = vsel %vm512_vm7, %v524_v39, 0.0 }
 0x14b   :  { %526 = vadd.xlane.f32.xlu0 %v525_v40 }
 0x1cc   :  { %v515_v42 = vpop.xlane.xlu0 %514 }
 0x1d0   :  { %v523_v43 = vpop.xlane.xlu0 %522 }
 0x1d2   :  { %v518_v44 = vpop.xlane.xlu1 %517 }
 0x1d3   :  { %v519_v45 = vadd.f32 %v518_v44, %v515_v42 }
 0x1d4   :  { %v527_v46 = vpop.xlane.xlu0 %526 }
 0x1d5   :  { %v529_v47 = vmul.f32 0.03125, %v519_v45  ;;  %v528_v48 = vadd.f32 %v527_v46, %v523_v43 }
 0x1d7   :  { %v531_v49 = vmul.f32 %v529_v47, %v529_v47  ;;  %v530_v50 = vmul.f32 0.03125, %v528_v48 }
 0x1d9   :  { %v532_v51 = vsub.f32 %v530_v50, %v531_v49 }
 0x1db   :  { %v533_v52 = vmax.f32 %v532_v51, 0.0 }
 0x1dd   :  { %v534_v53 = vadd.f32 1e-05, %v533_v52 }
 0x1df   :  { %2334 = vrsqrt.f32 %v534_v53 }
 0x1ec   :  { %v2335_v55 = vpop.eup %2334 }
 0x1ed   :  { %v536_v56 = vmul.f32 %v2335_v55, %v46_v54 }
 0x1ef   :  { %541 = vperm.xlu1 %2332, %v536_v56   ;;  %v537_v58 = vmul.f32 %v536_v56, %v529_v47 }
 0x1f1   :  { %v538_v59 = vsub.f32 %v2111_v57, %v537_v58 }
 0x1f3   :  { %547 = vperm.xlu0 %2333, %v538_v59  }
 0x26a   :  { %v542_v60 = vpop.permute.xlu1 %541 }
 0x26b   :  { %v544_v61 = vmul.f32 %v542_v60, %v297_v28  ;;  %v551_v62 = vmul.f32 %v542_v60, %v511_v35  ;;  %v2126_v60 = vld [vmem:[%s2642_s3 + $0x10] sm:$0xff] }
 0x26e   :  { %v548_v63 = vpop.permute.xlu0 %547 }
 0x26f   :  { %v550_v0 = vadd.f32 %v548_v63, %v544_v61  ;;  %v552_v1 = vadd.f32 %v551_v62, %v548_v63  ;;  %v2127_v63 = vld [vmem:[%s2642_s3 + $0x18] sm:$0xff] }
 0x271   :  { %v554_v3 = vmul.f32 0.70710677, %v550_v0  ;;  %v559_v4 = vmul.f32 0.70710677, %v552_v1  ;;  %v553_v7 = vmul.f32 0.5, %v550_v0  ;;  %v558_v9 = vmul.f32 0.5, %v552_v1 }
 0x273   :  { %2336 = verf.f32 %v554_v3 }
 0x274   :  { %2338 = verf.f32 %v559_v4 }
 0x280   :  { %v2337_v5 = vpop.eup %2336 }
 0x281   :  { %v2339_v6 = vpop.eup %2338  ;;  %v556_v8 = vadd.f32 1.0, %v2337_v5 }
 0x282   :  { %v561_v10 = vadd.f32 1.0, %v2339_v6 }
 0x283   :  { %v557_v12 = vmul.f32 %v556_v8, %v553_v7 }
 0x284   :  { %v562_v14 = vmul.f32 %v561_v10, %v558_v9 }
 0x285   :  { %2235 = vmatpush3.msra.mxu0 %v557_v12 }
 0x286   :  { %573 = vrot.lane.b32.xlu1 %v562_v14, %s2380_s19  ;;  %2237 = vmatmul.mubr.msk.f32.vlgmr.msra.gmra.mxu0 %vm590_vm8, %v2124_v13 }
 0x287   :  { %2244 = vmatprep.subr.mxu0 %v2382_v2  ;;  %2246 = vmatprep.mubr.msk.f32.mxu0 %vm2383_vm2, %v2382_v2 }
 0x288   :  { %2245 = vmatpush3.msra.mxu0 %v562_v14 }
 0x289   :  { %2254 = vmatprep.subr.mxu0 %v2382_v2 }
 0x28a   :  { %576 = vrot.lane.b32.xlu1 %v562_v14, %s2384_s0  ;;  %2247 = vmatmul.mubr.msk.f32.vlgmr.msra.gmra.mxu0 %vm590_vm8, %v2125_v15 }
 0x28b   :  { %2255 = vmatpush3.msra.mxu0 %v557_v12  ;;  %2256 = vmatprep.mubr.msk.f32.mxu0 %vm2383_vm2, %v2382_v2 }
 0x28c   :  { %2264 = vmatprep.subr.mxu0 %v2382_v2 }
 0x28e   :  { %582 = vrot.lane.b32.xlu1 %v557_v12, %s2381_s20  ;;  %2257 = vmatmul.mubr.msk.f32.vlgmr.msra.gmra.mxu0 %vm590_vm8, %v563_v17 }
 0x28f   :  { %2266 = vmatprep.mubr.msk.f32.mxu0 %vm2383_vm2, %v2382_v2 }
 0x292   :  { %585 = vrot.lane.b32.xlu1 %v557_v12, %s2385_s25 }
 0x2f8   :  { %v574_v18 = vpop.permute.xlu1 %573 }
 0x2fc   :  { %v577_v19 = vpop.permute.xlu1 %576 }
 0x2fd   :  { %v579_v20 = vsel %vm56_vm4, %v574_v18, %v577_v19 }
 0x2fe   :  { %v580_v21 = vmul.f32 %v2454_v11, %v579_v20  ;;  %v2135_v20 = vld [vmem:[%s2641_s2 + $0x20] sm:$0xff] }
 0x300   :  { %2240 = vmatpush3.msra.mxu1 %v580_v21  ;;  %v583_v22 = vpop.permute.xlu1 %582 }
 0x301   :  { %2242 = vmatmul.mubr.msk.f32.vlgmr.msra.gmra.mxu1 %vm590_vm8, %v563_v17  ;;  %2249 = vmatprep.subr.mxu1 %v2382_v2 }
 0x302   :  { %2250 = vmatpush3.msra.mxu1 %v562_v14  ;;  %2251 = vmatprep.mubr.msk.f32.mxu1 %vm2383_vm2, %v2382_v2 }
 0x303   :  { %2259 = vmatprep.subr.mxu1 %v2382_v2 }
 0x304   :  { %v586_v23 = vpop.permute.xlu1 %585 }
 0x305   :  { %v588_v24 = vsel %vm66_vm5, %v583_v22, %v586_v23  ;;  %2252 = vmatmul.mubr.msk.f32.vlgmr.msra.gmra.mxu1 %vm590_vm8, %v2124_v13  ;;  %v2136_v22 = vld [vmem:[%s2641_s2 + $0x28] sm:$0xff]  ;;  %v2134_v23 = vld [vmem:[%s2641_s2 + $0x18] sm:$0xff] }
 0x306   :  { %v589_v25 = vmul.f32 %v2459_v16, %v588_v24  ;;  %2261 = vmatprep.mubr.msk.f32.mxu1 %vm2383_vm2, %v2382_v2 }
 0x308   :  { %2260 = vmatpush3.msra.mxu1 %v589_v25 }
 0x309   :  { %2262 = vmatmul.mubr.msk.f32.vlgmr.msra.gmra.mxu1 %vm590_vm8, %v2125_v15  ;;  %2269 = vmatprep.subr.mxu1 %v2382_v2 }
 0x30a   :  { %2271 = vmatprep.mubr.msk.f32.mxu1 %vm2383_vm2, %v2382_v2 }
 0x346   :  { %v660_v26 = vpop.f32.mrf.mxu0 }
 0x348   :  { %v2238_v27 = vpop.f32.mrf.mxu0 }
 0x34a   :  { %v806_v28 = vpop.f32.mrf.mxu0 }
 0x34c   :  { %v2248_v29 = vpop.f32.mrf.mxu0 }
 0x34e   :  { %v947_v30 = vpop.f32.mrf.mxu0 }
 0x350   :  { %v2258_v31 = vpop.f32.mrf.mxu0 }
 0x3c1   :  { %v733_v32 = vpop.f32.mrf.mxu1 }
 0x3c2   :  { %v734_v33 = vadd.f32 %v733_v32, %v660_v26 }
 0x3c3   :  { %v2243_v34 = vpop.f32.mrf.mxu1 }
 0x3c4   :  { %v810_v35 = vadd.f32 %v806_v28, %v734_v33 }
 0x3c5   :  { %v877_v36 = vpop.f32.mrf.mxu1 }
 0x3c6   :  { %v1022_v37 = vsel %vm512_vm7, %v810_v35, 0.0  ;;  %v1029_v38 = vmul.f32 %v810_v35, %v810_v35  ;;  %v948_v40 = vadd.f32 %v947_v30, %v877_v36 }
 0x3c7   :  { %1023 = vadd.xlane.f32.xlu1 %v1022_v37  ;;  %v2253_v39 = vpop.f32.mrf.mxu1 }
 0x3c8   :  { %v1030_v43 = vsel %vm512_vm7, %v1029_v38, 0.0 }
 0x3c9   :  { %v1017_v41 = vpop.f32.mrf.mxu1 }
 0x3ca   :  { %v1021_v42 = vadd.f32 %v1017_v41, %v948_v40 }
 0x3cb   :  { %1031 = vadd.xlane.f32.xlu1 %v1030_v43  ;;  %v2263_v44 = vpop.f32.mrf.mxu1 }
 0x3cc   :  { %v1025_v45 = vsel %vm512_vm7, %v1021_v42, 0.0  ;;  %v1033_v46 = vmul.f32 %v1021_v42, %v1021_v42 }
 0x3cd   :  { %1026 = vadd.xlane.f32.xlu0 %v1025_v45 }
 0x3ce   :  { %v1034_v47 = vsel %vm512_vm7, %v1033_v46, 0.0 }
 0x3cf   :  { %1035 = vadd.xlane.f32.xlu1 %v1034_v47 }
 0x450   :  { %v1024_v48 = vpop.xlane.xlu1 %1023 }
 0x454   :  { %v1032_v49 = vpop.xlane.xlu1 %1031 }
 0x456   :  { %v1027_v50 = vpop.xlane.xlu0 %1026 }
 0x457   :  { %v1028_v51 = vadd.f32 %v1027_v50, %v1024_v48 }
 0x458   :  { %v1036_v52 = vpop.xlane.xlu1 %1035 }
 0x459   :  { %v1038_v53 = vmul.f32 0.03125, %v1028_v51  ;;  %v1037_v54 = vadd.f32 %v1036_v52, %v1032_v49 }
 0x45b   :  { %v1040_v55 = vmul.f32 %v1038_v53, %v1038_v53  ;;  %v1039_v56 = vmul.f32 0.03125, %v1037_v54 }
 0x45d   :  { %v1041_v57 = vsub.f32 %v1039_v56, %v1040_v55 }
 0x45f   :  { %v1042_v58 = vmax.f32 %v1041_v57, 0.0 }
 0x461   :  { %v1043_v59 = vadd.f32 1e-05, %v1042_v58 }
 0x463   :  { %2340 = vrsqrt.f32 %v1043_v59 }
 0x470   :  { %v2341_v61 = vpop.eup %2340 }
 0x471   :  { %v1045_v62 = vmul.f32 %v2341_v61, %v2126_v60 }
 0x473   :  { %1050 = vperm.xlu1 %2332, %v1045_v62   ;;  %v1046_v0 = vmul.f32 %v1045_v62, %v1038_v53 }
 0x475   :  { %v1047_v1 = vsub.f32 %v2127_v63, %v1046_v0 }
 0x477   :  { %1056 = vperm.xlu0 %2333, %v1047_v1  }
 0x4ee   :  { %v1051_v3 = vpop.permute.xlu1 %1050 }
 0x4ef   :  { %v1053_v4 = vmul.f32 %v1051_v3, %v810_v35  ;;  %v1060_v5 = vmul.f32 %v1051_v3, %v1021_v42  ;;  %v2137_v3 = vld [vmem:[%s2642_s3 + $0x20] sm:$0xff] }
 0x4f2   :  { %v1057_v6 = vpop.permute.xlu0 %1056 }
 0x4f3   :  { %v1059_v7 = vadd.f32 %v1057_v6, %v1053_v4  ;;  %v1061_v8 = vadd.f32 %v1060_v5, %v1057_v6  ;;  %v2138_v6 = vld [vmem:[%s2642_s3 + $0x28] sm:$0xff] }
 0x4f5   :  { %v1063_v9 = vmul.f32 0.70710677, %v1059_v7  ;;  %v1068_v10 = vmul.f32 0.70710677, %v1061_v8  ;;  %v1062_v14 = vmul.f32 0.5, %v1059_v7  ;;  %v1067_v17 = vmul.f32 0.5, %v1061_v8 }
 0x4f7   :  { %2342 = verf.f32 %v1063_v9 }
 0x4f8   :  { %2344 = verf.f32 %v1068_v10 }
 0x504   :  { %v2343_v12 = vpop.eup %2342 }
 0x505   :  { %v2345_v13 = vpop.eup %2344  ;;  %v1065_v15 = vadd.f32 1.0, %v2343_v12 }
 0x506   :  { %v1070_v18 = vadd.f32 1.0, %v2345_v13 }
 0x507   :  { %v1066_v19 = vmul.f32 %v1065_v15, %v1062_v14 }
 0x508   :  { %v1071_v21 = vmul.f32 %v1070_v18, %v1067_v17 }
 0x509   :  { %1092 = vrot.lane.b32.xlu0 %v1066_v19, %s2381_s20  ;;  %2265 = vmatpush3.msra.mxu0 %v1066_v19 }
 0x50a   :  { %1083 = vrot.lane.b32.xlu1 %v1071_v21, %s2380_s19  ;;  %2267 = vmatmul.mubr.msk.f32.vlgmr.msra.gmra.mxu0 %vm590_vm8, %v2135_v20 }
 0x50b   :  { %2274 = vmatprep.subr.mxu0 %v2382_v2  ;;  %2276 = vmatprep.mubr.msk.f32.mxu0 %vm2383_vm2, %v2382_v2 }
 0x50c   :  { %2275 = vmatpush3.msra.mxu0 %v1071_v21 }
 0x50d   :  { %2284 = vmatprep.subr.mxu0 %v2382_v2 }
 0x50e   :  { %1086 = vrot.lane.b32.xlu1 %v1071_v21, %s2384_s0  ;;  %2277 = vmatmul.mubr.msk.f32.vlgmr.msra.gmra.mxu0 %vm590_vm8, %v2136_v22 }
 0x50f   :  { %2285 = vmatpush3.msra.mxu0 %v1066_v19  ;;  %2286 = vmatprep.mubr.msk.f32.mxu0 %vm2383_vm2, %v2382_v2 }
 0x510   :  { %2294 = vmatprep.subr.mxu0 %v2382_v2 }
 0x512   :  { %1095 = vrot.lane.b32.xlu1 %v1066_v19, %s2385_s25  ;;  %2287 = vmatmul.mubr.msk.f32.vlgmr.msra.gmra.mxu0 %vm590_vm8, %v2134_v23 }
 0x513   :  { %2296 = vmatprep.mubr.msk.f32.mxu0 %vm2383_vm2, %v2382_v2 }
 0x57b   :  { %v1093_v28 = vpop.permute.xlu0 %1092 }
 0x57c   :  { %v1084_v24 = vpop.permute.xlu1 %1083 }
 0x580   :  { %v1087_v25 = vpop.permute.xlu1 %1086 }
 0x581   :  { %v1089_v26 = vsel %vm56_vm4, %v1084_v24, %v1087_v25 }
 0x582   :  { %v1090_v27 = vmul.f32 %v2454_v11, %v1089_v26  ;;  %v2146_v26 = vld [vmem:[%s2641_s2 + $0x38] sm:$0xff] }
 0x584   :  { %2270 = vmatpush3.msra.mxu1 %v1090_v27  ;;  %v1096_v29 = vpop.permute.xlu1 %1095 }
 0x585   :  { %v1098_v30 = vsel %vm66_vm5, %v1093_v28, %v1096_v29  ;;  %2272 = vmatmul.mubr.msk.f32.vlgmr.msra.gmra.mxu1 %vm590_vm8, %v2134_v23  ;;  %2279 = vmatprep.subr.mxu1 %v2382_v2  ;;  %v2147_v28 = vld [vmem:[%s2641_s2 + $0x40] sm:$0xff]  ;;  %v2145_v29 = vld [vmem:[%s2641_s2 + $0x30] sm:$0xff] }
 0x586   :  { %v1099_v31 = vmul.f32 %v2459_v16, %v1098_v30  ;;  %2280 = vmatpush3.msra.mxu1 %v1071_v21  ;;  %2281 = vmatprep.mubr.msk.f32.mxu1 %vm2383_vm2, %v2382_v2 }
 0x587   :  { %2289 = vmatprep.subr.mxu1 %v2382_v2 }
 0x589   :  { %2282 = vmatmul.mubr.msk.f32.vlgmr.msra.gmra.mxu1 %vm590_vm8, %v2135_v20 }
 0x58a   :  { %2290 = vmatpush3.msra.mxu1 %v1099_v31  ;;  %2291 = vmatprep.mubr.msk.f32.mxu1 %vm2383_vm2, %v2382_v2 }
 0x58b   :  { %2299 = vmatprep.subr.mxu1 %v2382_v2 }
 0x58d   :  { %2292 = vmatmul.mubr.msk.f32.vlgmr.msra.gmra.mxu1 %vm590_vm8, %v2136_v22 }
 0x58e   :  { %2301 = vmatprep.mubr.msk.f32.mxu1 %vm2383_vm2, %v2382_v2 }
 0x5ca   :  { %v1169_v32 = vpop.f32.mrf.mxu0 }
 0x5cc   :  { %v2268_v33 = vpop.f32.mrf.mxu0 }
 0x5ce   :  { %v1315_v34 = vpop.f32.mrf.mxu0 }
 0x5d0   :  { %v2278_v35 = vpop.f32.mrf.mxu0 }
 0x5d2   :  { %v1456_v36 = vpop.f32.mrf.mxu0 }
 0x5d4   :  { %v2288_v37 = vpop.f32.mrf.mxu0 }
 0x645   :  { %v1242_v38 = vpop.f32.mrf.mxu1 }
 0x646   :  { %v1243_v39 = vadd.f32 %v1242_v38, %v1169_v32 }
 0x647   :  { %v2273_v40 = vpop.f32.mrf.mxu1 }
 0x648   :  { %v1319_v41 = vadd.f32 %v1315_v34, %v1243_v39 }
 0x649   :  { %v1386_v42 = vpop.f32.mrf.mxu1 }
 0x64a   :  { %v1531_v43 = vsel %vm512_vm7, %v1319_v41, 0.0  ;;  %v1538_v44 = vmul.f32 %v1319_v41, %v1319_v41  ;;  %v1457_v46 = vadd.f32 %v1456_v36, %v1386_v42 }
 0x64b   :  { %1532 = vadd.xlane.f32.xlu0 %v1531_v43  ;;  %v2283_v45 = vpop.f32.mrf.mxu1 }
 0x64c   :  { %v1539_v49 = vsel %vm512_vm7, %v1538_v44, 0.0 }
 0x64d   :  { %v1526_v47 = vpop.f32.mrf.mxu1 }
 0x64e   :  { %v1530_v48 = vadd.f32 %v1526_v47, %v1457_v46 }
 0x64f   :  { %1540 = vadd.xlane.f32.xlu0 %v1539_v49  ;;  %v2293_v50 = vpop.f32.mrf.mxu1 }
 0x650   :  { %v1534_v51 = vsel %vm512_vm7, %v1530_v48, 0.0  ;;  %v1542_v52 = vmul.f32 %v1530_v48, %v1530_v48 }
 0x651   :  { %1535 = vadd.xlane.f32.xlu1 %v1534_v51 }
 0x652   :  { %v1543_v53 = vsel %vm512_vm7, %v1542_v52, 0.0 }
 0x653   :  { %1544 = vadd.xlane.f32.xlu0 %v1543_v53 }
 0x6d4   :  { %v1533_v54 = vpop.xlane.xlu0 %1532 }
 0x6d8   :  { %v1541_v55 = vpop.xlane.xlu0 %1540 }
 0x6da   :  { %v1536_v56 = vpop.xlane.xlu1 %1535 }
 0x6db   :  { %v1537_v57 = vadd.f32 %v1536_v56, %v1533_v54 }
 0x6dc   :  { %v1545_v58 = vpop.xlane.xlu0 %1544 }
 0x6dd   :  { %v1547_v59 = vmul.f32 0.03125, %v1537_v57  ;;  %v1546_v60 = vadd.f32 %v1545_v58, %v1541_v55 }
 0x6df   :  { %v1549_v61 = vmul.f32 %v1547_v59, %v1547_v59  ;;  %v1548_v62 = vmul.f32 0.03125, %v1546_v60 }
 0x6e1   :  { %v1550_v63 = vsub.f32 %v1548_v62, %v1549_v61 }
 0x6e3   :  { %v1551_v0 = vmax.f32 %v1550_v63, 0.0 }
 0x6e5   :  { %v1552_v1 = vadd.f32 1e-05, %v1551_v0 }
 0x6e7   :  { %2346 = vrsqrt.f32 %v1552_v1 }
 0x6f4   :  { %v2347_v4 = vpop.eup %2346 }
 0x6f5   :  { %v1554_v5 = vmul.f32 %v2347_v4, %v2137_v3 }
 0x6f7   :  { %1559 = vperm.xlu1 %2332, %v1554_v5   ;;  %v1555_v7 = vmul.f32 %v1554_v5, %v1547_v59 }
 0x6f9   :  { %v1556_v8 = vsub.f32 %v2138_v6, %v1555_v7  ;;  %v2148_v6 = vld [vmem:[%s2642_s3 + $0x30] sm:$0xff] }
 0x6fb   :  { %1565 = vperm.xlu0 %2333, %v1556_v8  }
 0x772   :  { %v1560_v9 = vpop.permute.xlu1 %1559 }
 0x773   :  { %v1562_v10 = vmul.f32 %v1560_v9, %v1319_v41  ;;  %v1569_v12 = vmul.f32 %v1560_v9, %v1530_v48  ;;  %v2149_v9 = vld [vmem:[%s2642_s3 + $0x38] sm:$0xff]  ;;  %s2387_s3 = smov [#allocation2]  }
 0x774   :  { %s2098_s6 = sshll.u32 %s2387_s3, 4  ;;  %s2099_s6 = int_to_ptr.vmem [resolvable:$true] %s2098_s6 }
 0x775   :  { %s2358_s7 = scalar_lea.vmem %s2099_s6, 128  ;;  %p2363_p1 = scmp.lt.s32.totalorder %s2099_s6, %s2099_s6 }
 0x776   :  { %v1566_v13 = vpop.permute.xlu0 %1565  ;;  %p2359_p0 = scmp.ne.s32.totalorder %s2099_s6, %s2358_s7  ;;  %p2364_p2 = scmp.lt.s32.totalorder %s2358_s7, %s2358_s7 }
 0x777   :  { %v1568_v14 = vadd.f32 %v1566_v13, %v1562_v10  ;;  %v1570_v15 = vadd.f32 %v1569_v12, %v1566_v13 }
 0x778   :  { %p2365_p3 = por %p2364_p2, %p2363_p1 }
 0x779   :  { %v1572_v17 = vmul.f32 0.70710677, %v1568_v14  ;;  %v1577_v18 = vmul.f32 0.70710677, %v1570_v15  ;;  %v1571_v21 = vmul.f32 0.5, %v1568_v14  ;;  %v1576_v23 = vmul.f32 0.5, %v1570_v15 }
 0x77a   :  { %p2366_p4 = pnand %p2365_p3, %p2359_p0 }
 0x77b   :  { %2348 = verf.f32 %v1572_v17 }
 0x77c   :  { %2350 = verf.f32 %v1577_v18 }
 0x788   :  { %v2349_v19 = vpop.eup %2348 }
 0x789   :  { %v2351_v20 = vpop.eup %2350  ;;  %v1574_v22 = vadd.f32 1.0, %v2349_v19 }
 0x78a   :  { %v1579_v24 = vadd.f32 1.0, %v2351_v20 }
 0x78b   :  { %v1575_v25 = vmul.f32 %v1574_v22, %v1571_v21 }
 0x78c   :  { %v1580_v27 = vmul.f32 %v1579_v24, %v1576_v23 }
 0x78d   :  { %1601 = vrot.lane.b32.xlu0 %v1575_v25, %s2381_s20  ;;  %2295 = vmatpush3.msra.mxu0 %v1575_v25 }
 0x78e   :  { %1592 = vrot.lane.b32.xlu1 %v1580_v27, %s2380_s19  ;;  %2297 = vmatmul.mubr.msk.f32.vlgmr.msra.gmra.mxu0 %vm590_vm8, %v2146_v26 }
 0x78f   :  { %2304 = vmatprep.subr.mxu0 %v2382_v2  ;;  %2306 = vmatprep.mubr.msk.f32.mxu0 %vm2383_vm2, %v2382_v2 }
 0x790   :  { %2305 = vmatpush3.msra.mxu0 %v1580_v27 }
 0x791   :  { %2314 = vmatprep.subr.mxu0 %v2382_v2 }
 0x792   :  { %1595 = vrot.lane.b32.xlu1 %v1580_v27, %s2384_s0  ;;  %2307 = vmatmul.mubr.msk.f32.vlgmr.msra.gmra.mxu0 %vm590_vm8, %v2147_v28 }
 0x793   :  { %2315 = vmatpush3.msra.mxu0 %v1575_v25  ;;  %2316 = vmatprep.mubr.msk.f32.mxu0 %vm2383_vm2, %v2382_v2 }
 0x796   :  { %1604 = vrot.lane.b32.xlu1 %v1575_v25, %s2385_s25  ;;  %2317 = vmatmul.mubr.msk.f32.vlgmr.msra.gmra.mxu0 %vm590_vm8, %v2145_v29 }
 0x7ff   :  { %v1602_v34 = vpop.permute.xlu0 %1601 }
 0x800   :  { %v1593_v30 = vpop.permute.xlu1 %1592 }
 0x804   :  { %v1596_v31 = vpop.permute.xlu1 %1595 }
 0x805   :  { %v1598_v32 = vsel %vm56_vm4, %v1593_v30, %v1596_v31 }
 0x806   :  { %v1599_v33 = vmul.f32 %v2454_v11, %v1598_v32 }
 0x808   :  { %2300 = vmatpush3.msra.mxu1 %v1599_v33  ;;  %v1605_v35 = vpop.permute.xlu1 %1604 }
 0x809   :  { %v1607_v36 = vsel %vm66_vm5, %v1602_v34, %v1605_v35  ;;  %2302 = vmatmul.mubr.msk.f32.vlgmr.msra.gmra.mxu1 %vm590_vm8, %v2145_v29  ;;  %2309 = vmatprep.subr.mxu1 %v2382_v2 }
 0x80a   :  { %v1608_v37 = vmul.f32 %v2459_v16, %v1607_v36  ;;  %2310 = vmatpush3.msra.mxu1 %v1580_v27  ;;  %2311 = vmatprep.mubr.msk.f32.mxu1 %vm2383_vm2, %v2382_v2 }
 0x80b   :  { %2319 = vmatprep.subr.mxu1 %v2382_v2 }
 0x80d   :  { %2312 = vmatmul.mubr.msk.f32.vlgmr.msra.gmra.mxu1 %vm590_vm8, %v2146_v26 }
 0x80e   :  { %2320 = vmatpush3.msra.mxu1 %v1608_v37  ;;  %2321 = vmatprep.mubr.msk.f32.mxu1 %vm2383_vm2, %v2382_v2 }
 0x811   :  { %2322 = vmatmul.mubr.msk.f32.vlgmr.msra.gmra.mxu1 %vm590_vm8, %v2147_v28 }
 0x84e   :  { %v1678_v11 = vpop.f32.mrf.mxu0 }
 0x850   :  { %v2298_v38 = vpop.f32.mrf.mxu0 }
 0x852   :  { %v1824_v39 = vpop.f32.mrf.mxu0 }
 0x854   :  { %v2308_v40 = vpop.f32.mrf.mxu0 }
 0x856   :  { %v1965_v41 = vpop.f32.mrf.mxu0 }
 0x858   :  { %v2318_v16 = vpop.f32.mrf.mxu0 }
 0x8c9   :  { %v1751_v42 = vpop.f32.mrf.mxu1 }
 0x8ca   :  { %v1752_v43 = vadd.f32 %v1751_v42, %v1678_v11 }
 0x8cb   :  { %v2303_v44 = vpop.f32.mrf.mxu1 }
 0x8cc   :  { %v1828_v45 = vadd.f32 %v1824_v39, %v1752_v43 }
 0x8cd   :  { %v1895_v46 = vpop.f32.mrf.mxu1 }
 0x8ce   :  { %v2040_v47 = vsel %vm512_vm7, %v1828_v45, 0.0  ;;  %v2047_v48 = vmul.f32 %v1828_v45, %v1828_v45  ;;  %v1966_v50 = vadd.f32 %v1965_v41, %v1895_v46 }
 0x8cf   :  { %2041 = vadd.xlane.f32.xlu0 %v2040_v47  ;;  %v2313_v49 = vpop.f32.mrf.mxu1 }
 0x8d0   :  { %v2048_v52 = vsel %vm512_vm7, %v2047_v48, 0.0 }
 0x8d1   :  { %v2035_v2 = vpop.f32.mrf.mxu1 }
 0x8d2   :  { %v2039_v51 = vadd.f32 %v2035_v2, %v1966_v50 }
 0x8d3   :  { %2049 = vadd.xlane.f32.xlu0 %v2048_v52  ;;  %v2323_v53 = vpop.f32.mrf.mxu1 }
 0x8d4   :  { %v2043_v54 = vsel %vm512_vm7, %v2039_v51, 0.0  ;;  %v2051_v55 = vmul.f32 %v2039_v51, %v2039_v51 }
 0x8d5   :  { %2044 = vadd.xlane.f32.xlu1 %v2043_v54 }
 0x8d6   :  { %v2052_v56 = vsel %vm512_vm7, %v2051_v55, 0.0 }
 0x8d7   :  { %2053 = vadd.xlane.f32.xlu0 %v2052_v56 }
 0x958   :  { %v2042_v57 = vpop.xlane.xlu0 %2041 }
 0x95c   :  { %v2050_v58 = vpop.xlane.xlu0 %2049 }
 0x95e   :  { %v2045_v59 = vpop.xlane.xlu1 %2044 }
 0x95f   :  { %v2046_v60 = vadd.f32 %v2045_v59, %v2042_v57 }
 0x960   :  { %v2054_v61 = vpop.xlane.xlu0 %2053 }
 0x961   :  { %v2056_v62 = vmul.f32 0.03125, %v2046_v60  ;;  %v2055_v63 = vadd.f32 %v2054_v61, %v2050_v58 }
 0x963   :  { %v2058_v0 = vmul.f32 %v2056_v62, %v2056_v62  ;;  %v2057_v1 = vmul.f32 0.03125, %v2055_v63 }
 0x965   :  { %v2059_v3 = vsub.f32 %v2057_v1, %v2058_v0 }
 0x967   :  { %v2060_v4 = vmax.f32 %v2059_v3, 0.0 }
 0x969   :  { %v2061_v5 = vadd.f32 1e-05, %v2060_v4 }
 0x96b   :  { %2352 = vrsqrt.f32 %v2061_v5 }
 0x978   :  { %v2353_v7 = vpop.eup %2352 }
 0x979   :  { %v2063_v8 = vmul.f32 %v2353_v7, %v2148_v6 }
 0x97b   :  { %2068 = vperm.xlu1 %2332, %v2063_v8   ;;  %v2064_v10 = vmul.f32 %v2063_v8, %v2056_v62 }
 0x97d   :  { %v2065_v12 = vsub.f32 %v2149_v9, %v2064_v10 }
 0x97f   :  { %2074 = vperm.xlu0 %2333, %v2065_v12  }
 0x9f6   :  { %v2069_v13 = vpop.permute.xlu1 %2068 }
 0x9f7   :  { %v2071_v14 = vmul.f32 %v2069_v13, %v1828_v45  ;;  %v2078_v15 = vmul.f32 %v2069_v13, %v2039_v51 }
 0x9fa   :  { %v2075_v17 = vpop.permute.xlu0 %2074 }
 0x9fb   :  { %v2077_v18 = vadd.f32 %v2075_v17, %v2071_v14  ;;  %v2079_v19 = vadd.f32 %v2078_v15, %v2075_v17 }
 0x9fd   :  { %v2081_v20 = vmul.f32 0.70710677, %v2077_v18  ;;  %v2086_v21 = vmul.f32 0.70710677, %v2079_v19  ;;  %v2080_v24 = vmul.f32 0.5, %v2077_v18  ;;  %v2085_v26 = vmul.f32 0.5, %v2079_v19 }
 0x9ff   :  { %2354 = verf.f32 %v2081_v20 }
 0xa00   :  { %2356 = verf.f32 %v2086_v21 }
 0xa0c   :  { %v2355_v22 = vpop.eup %2354 }
 0xa0d   :  { %v2357_v23 = vpop.eup %2356  ;;  %v2083_v25 = vadd.f32 1.0, %v2355_v22 }
 0xa0e   :  { %v2088_v27 = vadd.f32 1.0, %v2357_v23 }
 0xa0f   :  { %v2084_v28 = vmul.f32 %v2083_v25, %v2080_v24 }
 0xa10   :  { %v2089_v29 = vmul.f32 %v2088_v27, %v2085_v26 }
 0xa12   :  { %v2090_v30 = vmax.f32 %v2084_v28, %v2089_v29 }
 0xa14   :  { %2091 = vst.msk [vmem:[#allocation2] sm:$0xff] %vm512_vm7, %v2090_v30 }
 0xa15   :  { %2369 = shalt.err (!%p2366_p4)
}
 0xa16   :  { %2101 = dma.vmem_to_hbm [thread:$0]  %s2099_s6, 128, %s2643_s4, [#allocation3]  }
 0xa17   :  { %2378 = dma.done.wait [#allocation3], 128  }
 0xa18   :  { %2379 = vsyncadd [#allocation3], 4294967168 }
 0xa19   :  { %2105 = vsyncpa [#allocation3], 1 }

</bundles_post_ra>
